<compile_context>
chip_gen: v5e
topology: v5e:2x2
jax: 0.10.0
libtpu: 0.0.40
codegen_flags: <defaults>
</compile_context>

<pallas_src>
import math

import jax
import jax.numpy as jnp
from jax.experimental import pallas as pl
from jax.experimental.pallas import tpu as pltpu

# ----------------------- tiny mT5 config (synthetic) -----------------------
VOCAB        = 64
D_MODEL      = 32
N_HEADS      = 2
D_KV         = 16          # per-head dim; N_HEADS * D_KV == D_MODEL
D_FF         = 64
N_LAYERS     = 1           # encoder layers == decoder layers
REL_BUCKETS  = 8
REL_MAX_DIST = 16
LN_EPS       = 1e-6
NEG_INF      = -1e9

BATCH = 2
SEQ   = 8

# per-layer parameter orderings (shared by init / wrapper / kernel unpack)
ENC_L_KEYS = ("ln1", "wq", "wk", "wv", "wo", "ln2", "wi0", "wi1", "wo_ff")
DEC_L_KEYS = ("ln1", "wq_s", "wk_s", "wv_s", "wo_s",
              "ln2", "wq_c", "wk_c", "wv_c", "wo_c",
              "ln3", "wi0", "wi1", "wo_ff")


# =============================== fused kernel ===============================

def _fused_forward_kernel(*refs):
    """One grid step == one batch element: both encoder passes, style diff,
    broadcast add, and the full decoder, all resident in VMEM/vregs."""
    ids_ref, emb_ref, enc_bias_ref, dec_bias_ref = refs[:4]
    out_ref = refs[-1]
    wrefs = iter(refs[4:-1])
    enc_layers = [{k: next(wrefs) for k in ENC_L_KEYS} for _ in range(N_LAYERS)]
    enc_final_ln = next(wrefs)
    dec_layers = [{k: next(wrefs) for k in DEC_L_KEYS} for _ in range(N_LAYERS)]
    dec_final_ln = next(wrefs)

    f32 = jnp.float32

    def rmsnorm(x, w_ref):
        # T5 LayerNorm: no mean subtraction, no bias.
        var = jnp.mean(x * x, axis=-1, keepdims=True)
        return x * jax.lax.rsqrt(var + LN_EPS) * w_ref[...]

    def softmax_rows(s):
        m = jnp.max(s, axis=-1, keepdims=True)
        p = jnp.exp(s - m)
        return p * pl.reciprocal(jnp.sum(p, axis=-1, keepdims=True), approx=True)

    def attention(xq, xkv, wq_ref, wk_ref, wv_ref, wo_ref, bias_ref):
        """xq: (Tq, D), xkv: (Tk, D); static loop over heads, all 2-D MXU ops.
        T5 attention does NOT scale by 1/sqrt(d_k)."""
        out = jnp.zeros((xq.shape[0], D_MODEL), f32)
        for h in range(N_HEADS):
            c0, c1 = h * D_KV, (h + 1) * D_KV
            qh = jnp.dot(xq, wq_ref[:, c0:c1], preferred_element_type=f32)
            kh = jnp.dot(xkv, wk_ref[:, c0:c1], preferred_element_type=f32)
            vh = jnp.dot(xkv, wv_ref[:, c0:c1], preferred_element_type=f32)
            s = jax.lax.dot_general(qh, kh, (((1,), (1,)), ((), ())),
                                    preferred_element_type=f32)
            if bias_ref is not None:
                s = s + bias_ref[h]          # (Tq, Tk) rel-pos bias (+ causal)
            p = softmax_rows(s)
            ctx = jnp.dot(p, vh, preferred_element_type=f32)
            out = out + jnp.dot(ctx, wo_ref[c0:c1, :], preferred_element_type=f32)
        return out

    def feed_forward(x, lp):
        # mT5 gated-GELU: wo( gelu_new(x@wi0) * (x@wi1) )
        g = jax.nn.gelu(jnp.dot(x, lp["wi0"][...], preferred_element_type=f32),
                        approximate=True)
        l = jnp.dot(x, lp["wi1"][...], preferred_element_type=f32)
        return jnp.dot(g * l, lp["wo_ff"][...], preferred_element_type=f32)

    def embed(ids_col):
        # (T, 1) int32 -> (T, D) via one-hot MXU matmul against the VMEM table.
        iota = jax.lax.broadcasted_iota(jnp.int32, (ids_col.shape[0], VOCAB), 1)
        onehot = (ids_col == iota).astype(f32)
        return jnp.dot(onehot, emb_ref[...], preferred_element_type=f32)

    def encoder_stack(x):
        for lp in enc_layers:
            h = rmsnorm(x, lp["ln1"])
            x = x + attention(h, h, lp["wq"], lp["wk"], lp["wv"], lp["wo"],
                              enc_bias_ref)
            h = rmsnorm(x, lp["ln2"])
            x = x + feed_forward(h, lp)
        return rmsnorm(x, enc_final_ln)

    def decoder_stack(x, enc_hidden):
        for lp in dec_layers:
            h = rmsnorm(x, lp["ln1"])
            x = x + attention(h, h, lp["wq_s"], lp["wk_s"], lp["wv_s"],
                              lp["wo_s"], dec_bias_ref)
            h = rmsnorm(x, lp["ln2"])
            x = x + attention(h, enc_hidden, lp["wq_c"], lp["wk_c"], lp["wv_c"],
                              lp["wo_c"], None)
            h = rmsnorm(x, lp["ln3"])
            x = x + feed_forward(h, lp)
        return rmsnorm(x, dec_final_ln)

    ids = ids_ref[0]                       # (2*SEQ, 1) int32
    x_emb    = embed(ids[0:SEQ])           # batch_x_ids embeddings      (S, D)
    para_emb = embed(ids[SEQ:2 * SEQ])     # batch_x_para_ids embeddings (S, D)

    enc_x    = encoder_stack(x_emb)        # encoder(batch_x_ids)
    enc_para = encoder_stack(para_emb)     # encoder(batch_x_para_ids) (computed once, reused)

    # style vectors from token 0; torch's .type(LongTensor) truncates toward 0
    s_diff = (enc_para[0:1, :] - enc_x[0:1, :]).astype(jnp.int32).astype(f32)
    altered = enc_para + s_diff            # broadcast-add over the sequence

    dec_out = decoder_stack(x_emb, altered)   # decoder(input_ids=batch_x_ids, enc_hidden=altered)
    out_ref[0] = dec_out


# =========================== model glue (plain JAX) =========================

def _relative_position_bucket(relative_position, bidirectional, num_buckets, max_distance):
    relative_buckets = jnp.zeros_like(relative_position)
    if bidirectional:
        num_buckets //= 2
        relative_buckets = relative_buckets + (relative_position > 0).astype(jnp.int32) * num_buckets
        relative_position = jnp.abs(relative_position)
    else:
        relative_position = -jnp.minimum(relative_position, 0)
    max_exact = num_buckets // 2
    is_small = relative_position < max_exact
    rel_f = jnp.maximum(relative_position.astype(jnp.float32), 1.0)
    rel_if_large = max_exact + (
        jnp.log(rel_f / max_exact) / math.log(max_distance / max_exact) * (num_buckets - max_exact)
    ).astype(jnp.int32)
    rel_if_large = jnp.minimum(rel_if_large, num_buckets - 1)
    relative_buckets = relative_buckets + jnp.where(is_small, relative_position, rel_if_large)
    return relative_buckets


def compute_position_bias(rel_emb, q_len, k_len, bidirectional):
    # TODO(synk): tiny (8x8) bucket math + (8,2) gather kept in plain JAX; no clean Pallas gather win.
    ctx = jnp.arange(q_len)[:, None]
    mem = jnp.arange(k_len)[None, :]
    buckets = _relative_position_bucket(mem - ctx, bidirectional, REL_BUCKETS, REL_MAX_DIST)
    values = rel_emb[buckets]                    # (q, k, H)
    return jnp.transpose(values, (2, 0, 1))      # (H, q, k)


def _const_index_map(ndim):
    return lambda b: (0,) * ndim


def mt5_paraphrase_forward(params, batch_x_ids, batch_x_para_ids):
    B, S = batch_x_ids.shape
    assert S == SEQ, "sequence length must match the compiled kernel config"

    # (B, 2S, 1): per batch element, rows [0:S) = batch_x_ids, [S:2S) = batch_x_para_ids
    ids_pair = jnp.concatenate([batch_x_ids, batch_x_para_ids], axis=1).astype(jnp.int32)[..., None]

    enc_bias = compute_position_bias(params["enc_rel_emb"], S, S, bidirectional=True)   # (H,S,S)
    dec_bias = compute_position_bias(params["dec_rel_emb"], S, S, bidirectional=False)
    causal = jnp.where(jnp.arange(S)[:, None] >= jnp.arange(S)[None, :], 0.0, NEG_INF)
    dec_bias = dec_bias + causal[None, :, :]                                            # (H,S,S)

    flat = [params["shared"], enc_bias, dec_bias]
    for lp in params["enc_layers"]:
        flat += [lp[k] for k in ENC_L_KEYS]
    flat.append(params["enc_final_ln"])
    for lp in params["dec_layers"]:
        flat += [lp[k] for k in DEC_L_KEYS]
    flat.append(params["dec_final_ln"])

    in_specs = [pl.BlockSpec((1, 2 * S, 1), lambda b: (b, 0, 0))]       # per-program token ids
    in_specs += [pl.BlockSpec(a.shape, _const_index_map(a.ndim)) for a in flat]

    out = pl.pallas_call(
        _fused_forward_kernel,
        grid=(B,),
        in_specs=in_specs,
        out_specs=pl.BlockSpec((1, S, D_MODEL), lambda b: (b, 0, 0)),
        out_shape=jax.ShapeDtypeStruct((B, S, D_MODEL), jnp.float32),
        compiler_params=pltpu.CompilerParams(dimension_semantics=("parallel",)),
    )(ids_pair, *flat)
    return {"last_hidden_state": out}


# ============================ deterministic params ==========================

def init_params(key):
    ks = iter(jax.random.split(key, 64))

    def w(shape, scale=0.05):
        return jax.random.normal(next(ks), shape, jnp.float32) * scale

    ln = lambda: jnp.ones((1, D_MODEL), jnp.float32)

    def enc_layer():
        return dict(ln1=ln(),
                    wq=w((D_MODEL, N_HEADS * D_KV)), wk=w((D_MODEL, N_HEADS * D_KV)),
                    wv=w((D_MODEL, N_HEADS * D_KV)), wo=w((N_HEADS * D_KV, D_MODEL)),
                    ln2=ln(),
                    wi0=w((D_MODEL, D_FF)), wi1=w((D_MODEL, D_FF)), wo_ff=w((D_FF, D_MODEL)))

    def dec_layer():
        return dict(ln1=ln(),
                    wq_s=w((D_MODEL, N_HEADS * D_KV)), wk_s=w((D_MODEL, N_HEADS * D_KV)),
                    wv_s=w((D_MODEL, N_HEADS * D_KV)), wo_s=w((N_HEADS * D_KV, D_MODEL)),
                    ln2=ln(),
                    wq_c=w((D_MODEL, N_HEADS * D_KV)), wk_c=w((D_MODEL, N_HEADS * D_KV)),
                    wv_c=w((D_MODEL, N_HEADS * D_KV)), wo_c=w((N_HEADS * D_KV, D_MODEL)),
                    ln3=ln(),
                    wi0=w((D_MODEL, D_FF)), wi1=w((D_MODEL, D_FF)), wo_ff=w((D_FF, D_MODEL)))

    return dict(shared=w((VOCAB, D_MODEL), scale=1.0),
                enc_rel_emb=w((REL_BUCKETS, N_HEADS)),
                dec_rel_emb=w((REL_BUCKETS, N_HEADS)),
                enc_layers=[enc_layer() for _ in range(N_LAYERS)],
                enc_final_ln=ln(),
                dec_layers=[dec_layer() for _ in range(N_LAYERS)],
                dec_final_ln=ln())


# ==================================== main ==================================

if __name__ == "__main__":
    key = jax.random.PRNGKey(0)
    pkey, ikey1, ikey2 = jax.random.split(key, 3)
    params = init_params(pkey)

    batch_x_ids = jax.random.randint(ikey1, (BATCH, SEQ), 0, VOCAB, dtype=jnp.int32)
    batch_x_para_ids = jax.random.randint(ikey2, (BATCH, SEQ), 0, VOCAB, dtype=jnp.int32)

    fwd = jax.jit(mt5_paraphrase_forward)
    out = fwd(params, batch_x_ids, batch_x_para_ids)
    jax.block_until_ready(out)

    assert out["last_hidden_state"].shape == (BATCH, SEQ, D_MODEL)
    assert bool(jnp.all(jnp.isfinite(out["last_hidden_state"])))
    print("KERNEL_OK")
</pallas_src>

<mosaic_0001>
module attributes {stable_mosaic.version = 11 : i64} {
  func.func @_fused_forward_kernel(%arg0: i32, %arg1: memref<1x16x1xi32, #tpu.memory_space<vmem>>, %arg2: memref<64x32xf32, #tpu.memory_space<vmem>>, %arg3: memref<2x8x8xf32, #tpu.memory_space<vmem>>, %arg4: memref<2x8x8xf32, #tpu.memory_space<vmem>>, %arg5: memref<1x32xf32, #tpu.memory_space<vmem>>, %arg6: memref<32x32xf32, #tpu.memory_space<vmem>>, %arg7: memref<32x32xf32, #tpu.memory_space<vmem>>, %arg8: memref<32x32xf32, #tpu.memory_space<vmem>>, %arg9: memref<32x32xf32, #tpu.memory_space<vmem>>, %arg10: memref<1x32xf32, #tpu.memory_space<vmem>>, %arg11: memref<32x64xf32, #tpu.memory_space<vmem>>, %arg12: memref<32x64xf32, #tpu.memory_space<vmem>>, %arg13: memref<64x32xf32, #tpu.memory_space<vmem>>, %arg14: memref<1x32xf32, #tpu.memory_space<vmem>>, %arg15: memref<1x32xf32, #tpu.memory_space<vmem>>, %arg16: memref<32x32xf32, #tpu.memory_space<vmem>>, %arg17: memref<32x32xf32, #tpu.memory_space<vmem>>, %arg18: memref<32x32xf32, #tpu.memory_space<vmem>>, %arg19: memref<32x32xf32, #tpu.memory_space<vmem>>, %arg20: memref<1x32xf32, #tpu.memory_space<vmem>>, %arg21: memref<32x32xf32, #tpu.memory_space<vmem>>, %arg22: memref<32x32xf32, #tpu.memory_space<vmem>>, %arg23: memref<32x32xf32, #tpu.memory_space<vmem>>, %arg24: memref<32x32xf32, #tpu.memory_space<vmem>>, %arg25: memref<1x32xf32, #tpu.memory_space<vmem>>, %arg26: memref<32x64xf32, #tpu.memory_space<vmem>>, %arg27: memref<32x64xf32, #tpu.memory_space<vmem>>, %arg28: memref<64x32xf32, #tpu.memory_space<vmem>>, %arg29: memref<1x32xf32, #tpu.memory_space<vmem>>, %arg30: memref<1x8x32xf32, #tpu.memory_space<vmem>>) attributes {dimension_semantics = [#tpu.dimension_semantics<parallel>], iteration_bounds = array<i64: 2>, scalar_prefetch = 0 : i64, scratch_operands = 0 : i64, tpu.core_type = #tpu.core_type<tc>, window_params = [{transform_indices = @transform_0, window_bounds = array<i64: 1, 16, 1>}, {pipeline_mode = #tpu.pipeline_mode<synchronous>, transform_indices = @transform_1, window_bounds = array<i64: 64, 32>}, {pipeline_mode = #tpu.pipeline_mode<synchronous>, transform_indices = @transform_2, window_bounds = array<i64: 2, 8, 8>}, {pipeline_mode = #tpu.pipeline_mode<synchronous>, transform_indices = @transform_3, window_bounds = array<i64: 2, 8, 8>}, {pipeline_mode = #tpu.pipeline_mode<synchronous>, transform_indices = @transform_4, window_bounds = array<i64: 1, 32>}, {pipeline_mode = #tpu.pipeline_mode<synchronous>, transform_indices = @transform_5, window_bounds = array<i64: 32, 32>}, {pipeline_mode = #tpu.pipeline_mode<synchronous>, transform_indices = @transform_6, window_bounds = array<i64: 32, 32>}, {pipeline_mode = #tpu.pipeline_mode<synchronous>, transform_indices = @transform_7, window_bounds = array<i64: 32, 32>}, {pipeline_mode = #tpu.pipeline_mode<synchronous>, transform_indices = @transform_8, window_bounds = array<i64: 32, 32>}, {pipeline_mode = #tpu.pipeline_mode<synchronous>, transform_indices = @transform_9, window_bounds = array<i64: 1, 32>}, {pipeline_mode = #tpu.pipeline_mode<synchronous>, transform_indices = @transform_10, window_bounds = array<i64: 32, 64>}, {pipeline_mode = #tpu.pipeline_mode<synchronous>, transform_indices = @transform_11, window_bounds = array<i64: 32, 64>}, {pipeline_mode = #tpu.pipeline_mode<synchronous>, transform_indices = @transform_12, window_bounds = array<i64: 64, 32>}, {pipeline_mode = #tpu.pipeline_mode<synchronous>, transform_indices = @transform_13, window_bounds = array<i64: 1, 32>}, {pipeline_mode = #tpu.pipeline_mode<synchronous>, transform_indices = @transform_14, window_bounds = array<i64: 1, 32>}, {pipeline_mode = #tpu.pipeline_mode<synchronous>, transform_indices = @transform_15, window_bounds = array<i64: 32, 32>}, {pipeline_mode = #tpu.pipeline_mode<synchronous>, transform_indices = @transform_16, window_bounds = array<i64: 32, 32>}, {pipeline_mode = #tpu.pipeline_mode<synchronous>, transform_indices = @transform_17, window_bounds = array<i64: 32, 32>}, {pipeline_mode = #tpu.pipeline_mode<synchronous>, transform_indices = @transform_18, window_bounds = array<i64: 32, 32>}, {pipeline_mode = #tpu.pipeline_mode<synchronous>, transform_indices = @transform_19, window_bounds = array<i64: 1, 32>}, {pipeline_mode = #tpu.pipeline_mode<synchronous>, transform_indices = @transform_20, window_bounds = array<i64: 32, 32>}, {pipeline_mode = #tpu.pipeline_mode<synchronous>, transform_indices = @transform_21, window_bounds = array<i64: 32, 32>}, {pipeline_mode = #tpu.pipeline_mode<synchronous>, transform_indices = @transform_22, window_bounds = array<i64: 32, 32>}, {pipeline_mode = #tpu.pipeline_mode<synchronous>, transform_indices = @transform_23, window_bounds = array<i64: 32, 32>}, {pipeline_mode = #tpu.pipeline_mode<synchronous>, transform_indices = @transform_24, window_bounds = array<i64: 1, 32>}, {pipeline_mode = #tpu.pipeline_mode<synchronous>, transform_indices = @transform_25, window_bounds = array<i64: 32, 64>}, {pipeline_mode = #tpu.pipeline_mode<synchronous>, transform_indices = @transform_26, window_bounds = array<i64: 32, 64>}, {pipeline_mode = #tpu.pipeline_mode<synchronous>, transform_indices = @transform_27, window_bounds = array<i64: 64, 32>}, {pipeline_mode = #tpu.pipeline_mode<synchronous>, transform_indices = @transform_28, window_bounds = array<i64: 1, 32>}, {transform_indices = @transform_29, window_bounds = array<i64: 1, 8, 32>}]} {
    %c0 = arith.constant 0 : index
    %c0_0 = arith.constant 0 : index
    %c0_1 = arith.constant 0 : index
    %0 = vector.load %arg1[%c0, %c0_0, %c0_1] : memref<1x16x1xi32, #tpu.memory_space<vmem>>, vector<1x16x1xi32>
    %1 = vector.shape_cast %0 : vector<1x16x1xi32> to vector<16x1xi32>
    %2 = vector.extract_strided_slice %1 {offsets = [0, 0], sizes = [8, 1], strides = [1, 1]} : vector<16x1xi32> to vector<8x1xi32>
    %3 = tpu.iota {dimensions = array<i32: 1>} : vector<8x64xi32>
    %4 = vector.broadcast %2 : vector<8x1xi32> to vector<8x64xi32>
    %5 = arith.cmpi eq, %4, %3 : vector<8x64xi32>
    %6 = arith.extui %5 : vector<8x64xi1> to vector<8x64xi32>
    %7 = arith.sitofp %6 : vector<8x64xi32> to vector<8x64xf32>
    %c0_2 = arith.constant 0 : index
    %c0_3 = arith.constant 0 : index
    %8 = vector.load %arg2[%c0_2, %c0_3] : memref<64x32xf32, #tpu.memory_space<vmem>>, vector<64x32xf32>
    %cst = arith.constant dense<0.000000e+00> : vector<8x32xf32>
    %9 = tpu.matmul %7, %8, %cst {dimension_numbers = #tpu.dot_dimension_numbers<[1], [0], [0], [1], [0, 0, 1, 1], [], []>} : vector<8x64xf32>, vector<64x32xf32>, vector<8x32xf32> -> vector<8x32xf32>
    %10 = vector.extract_strided_slice %1 {offsets = [8, 0], sizes = [8, 1], strides = [1, 1]} : vector<16x1xi32> to vector<8x1xi32>
    %11 = tpu.iota {dimensions = array<i32: 1>} : vector<8x64xi32>
    %12 = vector.broadcast %10 : vector<8x1xi32> to vector<8x64xi32>
    %13 = arith.cmpi eq, %12, %11 : vector<8x64xi32>
    %14 = arith.extui %13 : vector<8x64xi1> to vector<8x64xi32>
    %15 = arith.sitofp %14 : vector<8x64xi32> to vector<8x64xf32>
    %c0_4 = arith.constant 0 : index
    %c0_5 = arith.constant 0 : index
    %16 = vector.load %arg2[%c0_4, %c0_5] : memref<64x32xf32, #tpu.memory_space<vmem>>, vector<64x32xf32>
    %cst_6 = arith.constant dense<0.000000e+00> : vector<8x32xf32>
    %17 = tpu.matmul %15, %16, %cst_6 {dimension_numbers = #tpu.dot_dimension_numbers<[1], [0], [0], [1], [0, 0, 1, 1], [], []>} : vector<8x64xf32>, vector<64x32xf32>, vector<8x32xf32> -> vector<8x32xf32>
    %18 = arith.mulf %9, %9 : vector<8x32xf32>
    %cst_7 = arith.constant dense<0.000000e+00> : vector<8xf32>
    %19 = vector.multi_reduction <add>, %18, %cst_7 [1] : vector<8x32xf32> to vector<8xf32>
    %20 = vector.shape_cast %19 : vector<8xf32> to vector<8x1xf32>
    %cst_8 = arith.constant 3.200000e+01 : f32
    %21 = vector.broadcast %cst_8 : f32 to vector<8x1xf32>
    %22 = arith.divf %20, %21 : vector<8x1xf32>
    %cst_9 = arith.constant 9.99999997E-7 : f32
    %23 = vector.broadcast %cst_9 : f32 to vector<8x1xf32>
    %24 = arith.addf %22, %23 : vector<8x1xf32>
    %25 = math.rsqrt %24 : vector<8x1xf32>
    %26 = vector.broadcast %25 : vector<8x1xf32> to vector<8x32xf32>
    %27 = arith.mulf %9, %26 : vector<8x32xf32>
    %c0_10 = arith.constant 0 : index
    %c0_11 = arith.constant 0 : index
    %28 = vector.load %arg5[%c0_10, %c0_11] : memref<1x32xf32, #tpu.memory_space<vmem>>, vector<1x32xf32>
    %29 = vector.broadcast %28 : vector<1x32xf32> to vector<8x32xf32>
    %30 = arith.mulf %27, %29 : vector<8x32xf32>
    %cst_12 = arith.constant 0.000000e+00 : f32
    %31 = vector.broadcast %cst_12 : f32 to vector<8x32xf32>
    %c0_13 = arith.constant 0 : index
    %c0_14 = arith.constant 0 : index
    %32 = vector.load %arg6[%c0_13, %c0_14] : memref<32x32xf32, #tpu.memory_space<vmem>>, vector<32x16xf32>
    %cst_15 = arith.constant dense<0.000000e+00> : vector<8x16xf32>
    %33 = tpu.matmul %30, %32, %cst_15 {dimension_numbers = #tpu.dot_dimension_numbers<[1], [0], [0], [1], [0, 0, 1, 1], [], []>} : vector<8x32xf32>, vector<32x16xf32>, vector<8x16xf32> -> vector<8x16xf32>
    %c0_16 = arith.constant 0 : index
    %c0_17 = arith.constant 0 : index
    %34 = vector.load %arg7[%c0_16, %c0_17] : memref<32x32xf32, #tpu.memory_space<vmem>>, vector<32x16xf32>
    %cst_18 = arith.constant dense<0.000000e+00> : vector<8x16xf32>
    %35 = tpu.matmul %30, %34, %cst_18 {dimension_numbers = #tpu.dot_dimension_numbers<[1], [0], [0], [1], [0, 0, 1, 1], [], []>} : vector<8x32xf32>, vector<32x16xf32>, vector<8x16xf32> -> vector<8x16xf32>
    %c0_19 = arith.constant 0 : index
    %c0_20 = arith.constant 0 : index
    %36 = vector.load %arg8[%c0_19, %c0_20] : memref<32x32xf32, #tpu.memory_space<vmem>>, vector<32x16xf32>
    %cst_21 = arith.constant dense<0.000000e+00> : vector<8x16xf32>
    %37 = tpu.matmul %30, %36, %cst_21 {dimension_numbers = #tpu.dot_dimension_numbers<[1], [0], [0], [1], [0, 0, 1, 1], [], []>} : vector<8x32xf32>, vector<32x16xf32>, vector<8x16xf32> -> vector<8x16xf32>
    %cst_22 = arith.constant dense<0.000000e+00> : vector<8x8xf32>
    %38 = tpu.matmul %33, %35, %cst_22 {dimension_numbers = #tpu.dot_dimension_numbers<[1], [1], [0], [0], [0, 0, 1, 0], [], []>} : vector<8x16xf32>, vector<8x16xf32>, vector<8x8xf32> -> vector<8x8xf32>
    %c0_23 = arith.constant 0 : index
    %c0_24 = arith.constant 0 : index
    %c0_25 = arith.constant 0 : index
    %39 = vector.load %arg3[%c0_23, %c0_24, %c0_25] : memref<2x8x8xf32, #tpu.memory_space<vmem>>, vector<1x8x8xf32>
    %40 = vector.shape_cast %39 : vector<1x8x8xf32> to vector<8x8xf32>
    %41 = arith.addf %38, %40 : vector<8x8xf32>
    %cst_26 = arith.constant dense<0xFF800000> : vector<8xf32>
    %42 = vector.multi_reduction <maximumf>, %41, %cst_26 [1] : vector<8x8xf32> to vector<8xf32>
    %43 = vector.shape_cast %42 : vector<8xf32> to vector<8x1xf32>
    %44 = vector.broadcast %43 : vector<8x1xf32> to vector<8x8xf32>
    %45 = arith.subf %41, %44 : vector<8x8xf32>
    %46 = math.exp %45 : vector<8x8xf32>
    %cst_27 = arith.constant dense<0.000000e+00> : vector<8xf32>
    %47 = vector.multi_reduction <add>, %46, %cst_27 [1] : vector<8x8xf32> to vector<8xf32>
    %48 = vector.shape_cast %47 : vector<8xf32> to vector<8x1xf32>
    %49 = tpu.reciprocal %48 {approx = true} : vector<8x1xf32> -> vector<8x1xf32>
    %50 = vector.broadcast %49 : vector<8x1xf32> to vector<8x8xf32>
    %51 = arith.mulf %46, %50 : vector<8x8xf32>
    %cst_28 = arith.constant dense<0.000000e+00> : vector<8x16xf32>
    %52 = tpu.matmul %51, %37, %cst_28 {dimension_numbers = #tpu.dot_dimension_numbers<[1], [0], [0], [1], [0, 0, 1, 1], [], []>} : vector<8x8xf32>, vector<8x16xf32>, vector<8x16xf32> -> vector<8x16xf32>
    %c0_29 = arith.constant 0 : index
    %c0_30 = arith.constant 0 : index
    %53 = vector.load %arg9[%c0_29, %c0_30] : memref<32x32xf32, #tpu.memory_space<vmem>>, vector<16x32xf32>
    %cst_31 = arith.constant dense<0.000000e+00> : vector<8x32xf32>
    %54 = tpu.matmul %52, %53, %cst_31 {dimension_numbers = #tpu.dot_dimension_numbers<[1], [0], [0], [1], [0, 0, 1, 1], [], []>} : vector<8x16xf32>, vector<16x32xf32>, vector<8x32xf32> -> vector<8x32xf32>
    %55 = arith.addf %31, %54 : vector<8x32xf32>
    %c0_32 = arith.constant 0 : index
    %c16 = arith.constant 16 : index
    %56 = vector.load %arg6[%c0_32, %c16] : memref<32x32xf32, #tpu.memory_space<vmem>>, vector<32x16xf32>
    %cst_33 = arith.constant dense<0.000000e+00> : vector<8x16xf32>
    %57 = tpu.matmul %30, %56, %cst_33 {dimension_numbers = #tpu.dot_dimension_numbers<[1], [0], [0], [1], [0, 0, 1, 1], [], []>} : vector<8x32xf32>, vector<32x16xf32>, vector<8x16xf32> -> vector<8x16xf32>
    %c0_34 = arith.constant 0 : index
    %c16_35 = arith.constant 16 : index
    %58 = vector.load %arg7[%c0_34, %c16_35] : memref<32x32xf32, #tpu.memory_space<vmem>>, vector<32x16xf32>
    %cst_36 = arith.constant dense<0.000000e+00> : vector<8x16xf32>
    %59 = tpu.matmul %30, %58, %cst_36 {dimension_numbers = #tpu.dot_dimension_numbers<[1], [0], [0], [1], [0, 0, 1, 1], [], []>} : vector<8x32xf32>, vector<32x16xf32>, vector<8x16xf32> -> vector<8x16xf32>
    %c0_37 = arith.constant 0 : index
    %c16_38 = arith.constant 16 : index
    %60 = vector.load %arg8[%c0_37, %c16_38] : memref<32x32xf32, #tpu.memory_space<vmem>>, vector<32x16xf32>
    %cst_39 = arith.constant dense<0.000000e+00> : vector<8x16xf32>
    %61 = tpu.matmul %30, %60, %cst_39 {dimension_numbers = #tpu.dot_dimension_numbers<[1], [0], [0], [1], [0, 0, 1, 1], [], []>} : vector<8x32xf32>, vector<32x16xf32>, vector<8x16xf32> -> vector<8x16xf32>
    %cst_40 = arith.constant dense<0.000000e+00> : vector<8x8xf32>
    %62 = tpu.matmul %57, %59, %cst_40 {dimension_numbers = #tpu.dot_dimension_numbers<[1], [1], [0], [0], [0, 0, 1, 0], [], []>} : vector<8x16xf32>, vector<8x16xf32>, vector<8x8xf32> -> vector<8x8xf32>
    %c1 = arith.constant 1 : index
    %c0_41 = arith.constant 0 : index
    %c0_42 = arith.constant 0 : index
    %63 = vector.load %arg3[%c1, %c0_41, %c0_42] : memref<2x8x8xf32, #tpu.memory_space<vmem>>, vector<1x8x8xf32>
    %64 = vector.shape_cast %63 : vector<1x8x8xf32> to vector<8x8xf32>
    %65 = arith.addf %62, %64 : vector<8x8xf32>
    %cst_43 = arith.constant dense<0xFF800000> : vector<8xf32>
    %66 = vector.multi_reduction <maximumf>, %65, %cst_43 [1] : vector<8x8xf32> to vector<8xf32>
    %67 = vector.shape_cast %66 : vector<8xf32> to vector<8x1xf32>
    %68 = vector.broadcast %67 : vector<8x1xf32> to vector<8x8xf32>
    %69 = arith.subf %65, %68 : vector<8x8xf32>
    %70 = math.exp %69 : vector<8x8xf32>
    %cst_44 = arith.constant dense<0.000000e+00> : vector<8xf32>
    %71 = vector.multi_reduction <add>, %70, %cst_44 [1] : vector<8x8xf32> to vector<8xf32>
    %72 = vector.shape_cast %71 : vector<8xf32> to vector<8x1xf32>
    %73 = tpu.reciprocal %72 {approx = true} : vector<8x1xf32> -> vector<8x1xf32>
    %74 = vector.broadcast %73 : vector<8x1xf32> to vector<8x8xf32>
    %75 = arith.mulf %70, %74 : vector<8x8xf32>
    %cst_45 = arith.constant dense<0.000000e+00> : vector<8x16xf32>
    %76 = tpu.matmul %75, %61, %cst_45 {dimension_numbers = #tpu.dot_dimension_numbers<[1], [0], [0], [1], [0, 0, 1, 1], [], []>} : vector<8x8xf32>, vector<8x16xf32>, vector<8x16xf32> -> vector<8x16xf32>
    %c16_46 = arith.constant 16 : index
    %c0_47 = arith.constant 0 : index
    %77 = vector.load %arg9[%c16_46, %c0_47] : memref<32x32xf32, #tpu.memory_space<vmem>>, vector<16x32xf32>
    %cst_48 = arith.constant dense<0.000000e+00> : vector<8x32xf32>
    %78 = tpu.matmul %76, %77, %cst_48 {dimension_numbers = #tpu.dot_dimension_numbers<[1], [0], [0], [1], [0, 0, 1, 1], [], []>} : vector<8x16xf32>, vector<16x32xf32>, vector<8x32xf32> -> vector<8x32xf32>
    %79 = arith.addf %55, %78 : vector<8x32xf32>
    %80 = arith.addf %9, %79 : vector<8x32xf32>
    %81 = arith.mulf %80, %80 : vector<8x32xf32>
    %cst_49 = arith.constant dense<0.000000e+00> : vector<8xf32>
    %82 = vector.multi_reduction <add>, %81, %cst_49 [1] : vector<8x32xf32> to vector<8xf32>
    %83 = vector.shape_cast %82 : vector<8xf32> to vector<8x1xf32>
    %cst_50 = arith.constant 3.200000e+01 : f32
    %84 = vector.broadcast %cst_50 : f32 to vector<8x1xf32>
    %85 = arith.divf %83, %84 : vector<8x1xf32>
    %cst_51 = arith.constant 9.99999997E-7 : f32
    %86 = vector.broadcast %cst_51 : f32 to vector<8x1xf32>
    %87 = arith.addf %85, %86 : vector<8x1xf32>
    %88 = math.rsqrt %87 : vector<8x1xf32>
    %89 = vector.broadcast %88 : vector<8x1xf32> to vector<8x32xf32>
    %90 = arith.mulf %80, %89 : vector<8x32xf32>
    %c0_52 = arith.constant 0 : index
    %c0_53 = arith.constant 0 : index
    %91 = vector.load %arg10[%c0_52, %c0_53] : memref<1x32xf32, #tpu.memory_space<vmem>>, vector<1x32xf32>
    %92 = vector.broadcast %91 : vector<1x32xf32> to vector<8x32xf32>
    %93 = arith.mulf %90, %92 : vector<8x32xf32>
    %c0_54 = arith.constant 0 : index
    %c0_55 = arith.constant 0 : index
    %94 = vector.load %arg11[%c0_54, %c0_55] : memref<32x64xf32, #tpu.memory_space<vmem>>, vector<32x64xf32>
    %cst_56 = arith.constant dense<0.000000e+00> : vector<8x64xf32>
    %95 = tpu.matmul %93, %94, %cst_56 {dimension_numbers = #tpu.dot_dimension_numbers<[1], [0], [0], [1], [0, 0, 1, 1], [], []>} : vector<8x32xf32>, vector<32x64xf32>, vector<8x64xf32> -> vector<8x64xf32>
    %96 = arith.mulf %95, %95 : vector<8x64xf32>
    %97 = arith.mulf %95, %96 : vector<8x64xf32>
    %cst_57 = arith.constant 4.471500e-02 : f32
    %98 = vector.broadcast %cst_57 : f32 to vector<8x64xf32>
    %99 = arith.mulf %98, %97 : vector<8x64xf32>
    %100 = arith.addf %95, %99 : vector<8x64xf32>
    %cst_58 = arith.constant 0.797884583 : f32
    %101 = vector.broadcast %cst_58 : f32 to vector<8x64xf32>
    %102 = arith.mulf %101, %100 : vector<8x64xf32>
    %103 = math.tanh %102 : vector<8x64xf32>
    %cst_59 = arith.constant 1.000000e+00 : f32
    %104 = vector.broadcast %cst_59 : f32 to vector<8x64xf32>
    %105 = arith.addf %104, %103 : vector<8x64xf32>
    %cst_60 = arith.constant 5.000000e-01 : f32
    %106 = vector.broadcast %cst_60 : f32 to vector<8x64xf32>
    %107 = arith.mulf %106, %105 : vector<8x64xf32>
    %108 = arith.mulf %95, %107 : vector<8x64xf32>
    %c0_61 = arith.constant 0 : index
    %c0_62 = arith.constant 0 : index
    %109 = vector.load %arg12[%c0_61, %c0_62] : memref<32x64xf32, #tpu.memory_space<vmem>>, vector<32x64xf32>
    %cst_63 = arith.constant dense<0.000000e+00> : vector<8x64xf32>
    %110 = tpu.matmul %93, %109, %cst_63 {dimension_numbers = #tpu.dot_dimension_numbers<[1], [0], [0], [1], [0, 0, 1, 1], [], []>} : vector<8x32xf32>, vector<32x64xf32>, vector<8x64xf32> -> vector<8x64xf32>
    %111 = arith.mulf %108, %110 : vector<8x64xf32>
    %c0_64 = arith.constant 0 : index
    %c0_65 = arith.constant 0 : index
    %112 = vector.load %arg13[%c0_64, %c0_65] : memref<64x32xf32, #tpu.memory_space<vmem>>, vector<64x32xf32>
    %cst_66 = arith.constant dense<0.000000e+00> : vector<8x32xf32>
    %113 = tpu.matmul %111, %112, %cst_66 {dimension_numbers = #tpu.dot_dimension_numbers<[1], [0], [0], [1], [0, 0, 1, 1], [], []>} : vector<8x64xf32>, vector<64x32xf32>, vector<8x32xf32> -> vector<8x32xf32>
    %114 = arith.addf %80, %113 : vector<8x32xf32>
    %115 = arith.mulf %114, %114 : vector<8x32xf32>
    %cst_67 = arith.constant dense<0.000000e+00> : vector<8xf32>
    %116 = vector.multi_reduction <add>, %115, %cst_67 [1] : vector<8x32xf32> to vector<8xf32>
    %117 = vector.shape_cast %116 : vector<8xf32> to vector<8x1xf32>
    %cst_68 = arith.constant 3.200000e+01 : f32
    %118 = vector.broadcast %cst_68 : f32 to vector<8x1xf32>
    %119 = arith.divf %117, %118 : vector<8x1xf32>
    %cst_69 = arith.constant 9.99999997E-7 : f32
    %120 = vector.broadcast %cst_69 : f32 to vector<8x1xf32>
    %121 = arith.addf %119, %120 : vector<8x1xf32>
    %122 = math.rsqrt %121 : vector<8x1xf32>
    %123 = vector.broadcast %122 : vector<8x1xf32> to vector<8x32xf32>
    %124 = arith.mulf %114, %123 : vector<8x32xf32>
    %c0_70 = arith.constant 0 : index
    %c0_71 = arith.constant 0 : index
    %125 = vector.load %arg14[%c0_70, %c0_71] : memref<1x32xf32, #tpu.memory_space<vmem>>, vector<1x32xf32>
    %126 = vector.broadcast %125 : vector<1x32xf32> to vector<8x32xf32>
    %127 = arith.mulf %124, %126 : vector<8x32xf32>
    %128 = arith.mulf %17, %17 : vector<8x32xf32>
    %cst_72 = arith.constant dense<0.000000e+00> : vector<8xf32>
    %129 = vector.multi_reduction <add>, %128, %cst_72 [1] : vector<8x32xf32> to vector<8xf32>
    %130 = vector.shape_cast %129 : vector<8xf32> to vector<8x1xf32>
    %cst_73 = arith.constant 3.200000e+01 : f32
    %131 = vector.broadcast %cst_73 : f32 to vector<8x1xf32>
    %132 = arith.divf %130, %131 : vector<8x1xf32>
    %cst_74 = arith.constant 9.99999997E-7 : f32
    %133 = vector.broadcast %cst_74 : f32 to vector<8x1xf32>
    %134 = arith.addf %132, %133 : vector<8x1xf32>
    %135 = math.rsqrt %134 : vector<8x1xf32>
    %136 = vector.broadcast %135 : vector<8x1xf32> to vector<8x32xf32>
    %137 = arith.mulf %17, %136 : vector<8x32xf32>
    %c0_75 = arith.constant 0 : index
    %c0_76 = arith.constant 0 : index
    %138 = vector.load %arg5[%c0_75, %c0_76] : memref<1x32xf32, #tpu.memory_space<vmem>>, vector<1x32xf32>
    %139 = vector.broadcast %138 : vector<1x32xf32> to vector<8x32xf32>
    %140 = arith.mulf %137, %139 : vector<8x32xf32>
    %cst_77 = arith.constant 0.000000e+00 : f32
    %141 = vector.broadcast %cst_77 : f32 to vector<8x32xf32>
    %c0_78 = arith.constant 0 : index
    %c0_79 = arith.constant 0 : index
    %142 = vector.load %arg6[%c0_78, %c0_79] : memref<32x32xf32, #tpu.memory_space<vmem>>, vector<32x16xf32>
    %cst_80 = arith.constant dense<0.000000e+00> : vector<8x16xf32>
    %143 = tpu.matmul %140, %142, %cst_80 {dimension_numbers = #tpu.dot_dimension_numbers<[1], [0], [0], [1], [0, 0, 1, 1], [], []>} : vector<8x32xf32>, vector<32x16xf32>, vector<8x16xf32> -> vector<8x16xf32>
    %c0_81 = arith.constant 0 : index
    %c0_82 = arith.constant 0 : index
    %144 = vector.load %arg7[%c0_81, %c0_82] : memref<32x32xf32, #tpu.memory_space<vmem>>, vector<32x16xf32>
    %cst_83 = arith.constant dense<0.000000e+00> : vector<8x16xf32>
    %145 = tpu.matmul %140, %144, %cst_83 {dimension_numbers = #tpu.dot_dimension_numbers<[1], [0], [0], [1], [0, 0, 1, 1], [], []>} : vector<8x32xf32>, vector<32x16xf32>, vector<8x16xf32> -> vector<8x16xf32>
    %c0_84 = arith.constant 0 : index
    %c0_85 = arith.constant 0 : index
    %146 = vector.load %arg8[%c0_84, %c0_85] : memref<32x32xf32, #tpu.memory_space<vmem>>, vector<32x16xf32>
    %cst_86 = arith.constant dense<0.000000e+00> : vector<8x16xf32>
    %147 = tpu.matmul %140, %146, %cst_86 {dimension_numbers = #tpu.dot_dimension_numbers<[1], [0], [0], [1], [0, 0, 1, 1], [], []>} : vector<8x32xf32>, vector<32x16xf32>, vector<8x16xf32> -> vector<8x16xf32>
    %cst_87 = arith.constant dense<0.000000e+00> : vector<8x8xf32>
    %148 = tpu.matmul %143, %145, %cst_87 {dimension_numbers = #tpu.dot_dimension_numbers<[1], [1], [0], [0], [0, 0, 1, 0], [], []>} : vector<8x16xf32>, vector<8x16xf32>, vector<8x8xf32> -> vector<8x8xf32>
    %c0_88 = arith.constant 0 : index
    %c0_89 = arith.constant 0 : index
    %c0_90 = arith.constant 0 : index
    %149 = vector.load %arg3[%c0_88, %c0_89, %c0_90] : memref<2x8x8xf32, #tpu.memory_space<vmem>>, vector<1x8x8xf32>
    %150 = vector.shape_cast %149 : vector<1x8x8xf32> to vector<8x8xf32>
    %151 = arith.addf %148, %150 : vector<8x8xf32>
    %cst_91 = arith.constant dense<0xFF800000> : vector<8xf32>
    %152 = vector.multi_reduction <maximumf>, %151, %cst_91 [1] : vector<8x8xf32> to vector<8xf32>
    %153 = vector.shape_cast %152 : vector<8xf32> to vector<8x1xf32>
    %154 = vector.broadcast %153 : vector<8x1xf32> to vector<8x8xf32>
    %155 = arith.subf %151, %154 : vector<8x8xf32>
    %156 = math.exp %155 : vector<8x8xf32>
    %cst_92 = arith.constant dense<0.000000e+00> : vector<8xf32>
    %157 = vector.multi_reduction <add>, %156, %cst_92 [1] : vector<8x8xf32> to vector<8xf32>
    %158 = vector.shape_cast %157 : vector<8xf32> to vector<8x1xf32>
    %159 = tpu.reciprocal %158 {approx = true} : vector<8x1xf32> -> vector<8x1xf32>
    %160 = vector.broadcast %159 : vector<8x1xf32> to vector<8x8xf32>
    %161 = arith.mulf %156, %160 : vector<8x8xf32>
    %cst_93 = arith.constant dense<0.000000e+00> : vector<8x16xf32>
    %162 = tpu.matmul %161, %147, %cst_93 {dimension_numbers = #tpu.dot_dimension_numbers<[1], [0], [0], [1], [0, 0, 1, 1], [], []>} : vector<8x8xf32>, vector<8x16xf32>, vector<8x16xf32> -> vector<8x16xf32>
    %c0_94 = arith.constant 0 : index
    %c0_95 = arith.constant 0 : index
    %163 = vector.load %arg9[%c0_94, %c0_95] : memref<32x32xf32, #tpu.memory_space<vmem>>, vector<16x32xf32>
    %cst_96 = arith.constant dense<0.000000e+00> : vector<8x32xf32>
    %164 = tpu.matmul %162, %163, %cst_96 {dimension_numbers = #tpu.dot_dimension_numbers<[1], [0], [0], [1], [0, 0, 1, 1], [], []>} : vector<8x16xf32>, vector<16x32xf32>, vector<8x32xf32> -> vector<8x32xf32>
    %165 = arith.addf %141, %164 : vector<8x32xf32>
    %c0_97 = arith.constant 0 : index
    %c16_98 = arith.constant 16 : index
    %166 = vector.load %arg6[%c0_97, %c16_98] : memref<32x32xf32, #tpu.memory_space<vmem>>, vector<32x16xf32>
    %cst_99 = arith.constant dense<0.000000e+00> : vector<8x16xf32>
    %167 = tpu.matmul %140, %166, %cst_99 {dimension_numbers = #tpu.dot_dimension_numbers<[1], [0], [0], [1], [0, 0, 1, 1], [], []>} : vector<8x32xf32>, vector<32x16xf32>, vector<8x16xf32> -> vector<8x16xf32>
    %c0_100 = arith.constant 0 : index
    %c16_101 = arith.constant 16 : index
    %168 = vector.load %arg7[%c0_100, %c16_101] : memref<32x32xf32, #tpu.memory_space<vmem>>, vector<32x16xf32>
    %cst_102 = arith.constant dense<0.000000e+00> : vector<8x16xf32>
    %169 = tpu.matmul %140, %168, %cst_102 {dimension_numbers = #tpu.dot_dimension_numbers<[1], [0], [0], [1], [0, 0, 1, 1], [], []>} : vector<8x32xf32>, vector<32x16xf32>, vector<8x16xf32> -> vector<8x16xf32>
    %c0_103 = arith.constant 0 : index
    %c16_104 = arith.constant 16 : index
    %170 = vector.load %arg8[%c0_103, %c16_104] : memref<32x32xf32, #tpu.memory_space<vmem>>, vector<32x16xf32>
    %cst_105 = arith.constant dense<0.000000e+00> : vector<8x16xf32>
    %171 = tpu.matmul %140, %170, %cst_105 {dimension_numbers = #tpu.dot_dimension_numbers<[1], [0], [0], [1], [0, 0, 1, 1], [], []>} : vector<8x32xf32>, vector<32x16xf32>, vector<8x16xf32> -> vector<8x16xf32>
    %cst_106 = arith.constant dense<0.000000e+00> : vector<8x8xf32>
    %172 = tpu.matmul %167, %169, %cst_106 {dimension_numbers = #tpu.dot_dimension_numbers<[1], [1], [0], [0], [0, 0, 1, 0], [], []>} : vector<8x16xf32>, vector<8x16xf32>, vector<8x8xf32> -> vector<8x8xf32>
    %c1_107 = arith.constant 1 : index
    %c0_108 = arith.constant 0 : index
    %c0_109 = arith.constant 0 : index
    %173 = vector.load %arg3[%c1_107, %c0_108, %c0_109] : memref<2x8x8xf32, #tpu.memory_space<vmem>>, vector<1x8x8xf32>
    %174 = vector.shape_cast %173 : vector<1x8x8xf32> to vector<8x8xf32>
    %175 = arith.addf %172, %174 : vector<8x8xf32>
    %cst_110 = arith.constant dense<0xFF800000> : vector<8xf32>
    %176 = vector.multi_reduction <maximumf>, %175, %cst_110 [1] : vector<8x8xf32> to vector<8xf32>
    %177 = vector.shape_cast %176 : vector<8xf32> to vector<8x1xf32>
    %178 = vector.broadcast %177 : vector<8x1xf32> to vector<8x8xf32>
    %179 = arith.subf %175, %178 : vector<8x8xf32>
    %180 = math.exp %179 : vector<8x8xf32>
    %cst_111 = arith.constant dense<0.000000e+00> : vector<8xf32>
    %181 = vector.multi_reduction <add>, %180, %cst_111 [1] : vector<8x8xf32> to vector<8xf32>
    %182 = vector.shape_cast %181 : vector<8xf32> to vector<8x1xf32>
    %183 = tpu.reciprocal %182 {approx = true} : vector<8x1xf32> -> vector<8x1xf32>
    %184 = vector.broadcast %183 : vector<8x1xf32> to vector<8x8xf32>
    %185 = arith.mulf %180, %184 : vector<8x8xf32>
    %cst_112 = arith.constant dense<0.000000e+00> : vector<8x16xf32>
    %186 = tpu.matmul %185, %171, %cst_112 {dimension_numbers = #tpu.dot_dimension_numbers<[1], [0], [0], [1], [0, 0, 1, 1], [], []>} : vector<8x8xf32>, vector<8x16xf32>, vector<8x16xf32> -> vector<8x16xf32>
    %c16_113 = arith.constant 16 : index
    %c0_114 = arith.constant 0 : index
    %187 = vector.load %arg9[%c16_113, %c0_114] : memref<32x32xf32, #tpu.memory_space<vmem>>, vector<16x32xf32>
    %cst_115 = arith.constant dense<0.000000e+00> : vector<8x32xf32>
    %188 = tpu.matmul %186, %187, %cst_115 {dimension_numbers = #tpu.dot_dimension_numbers<[1], [0], [0], [1], [0, 0, 1, 1], [], []>} : vector<8x16xf32>, vector<16x32xf32>, vector<8x32xf32> -> vector<8x32xf32>
    %189 = arith.addf %165, %188 : vector<8x32xf32>
    %190 = arith.addf %17, %189 : vector<8x32xf32>
    %191 = arith.mulf %190, %190 : vector<8x32xf32>
    %cst_116 = arith.constant dense<0.000000e+00> : vector<8xf32>
    %192 = vector.multi_reduction <add>, %191, %cst_116 [1] : vector<8x32xf32> to vector<8xf32>
    %193 = vector.shape_cast %192 : vector<8xf32> to vector<8x1xf32>
    %cst_117 = arith.constant 3.200000e+01 : f32
    %194 = vector.broadcast %cst_117 : f32 to vector<8x1xf32>
    %195 = arith.divf %193, %194 : vector<8x1xf32>
    %cst_118 = arith.constant 9.99999997E-7 : f32
    %196 = vector.broadcast %cst_118 : f32 to vector<8x1xf32>
    %197 = arith.addf %195, %196 : vector<8x1xf32>
    %198 = math.rsqrt %197 : vector<8x1xf32>
    %199 = vector.broadcast %198 : vector<8x1xf32> to vector<8x32xf32>
    %200 = arith.mulf %190, %199 : vector<8x32xf32>
    %c0_119 = arith.constant 0 : index
    %c0_120 = arith.constant 0 : index
    %201 = vector.load %arg10[%c0_119, %c0_120] : memref<1x32xf32, #tpu.memory_space<vmem>>, vector<1x32xf32>
    %202 = vector.broadcast %201 : vector<1x32xf32> to vector<8x32xf32>
    %203 = arith.mulf %200, %202 : vector<8x32xf32>
    %c0_121 = arith.constant 0 : index
    %c0_122 = arith.constant 0 : index
    %204 = vector.load %arg11[%c0_121, %c0_122] : memref<32x64xf32, #tpu.memory_space<vmem>>, vector<32x64xf32>
    %cst_123 = arith.constant dense<0.000000e+00> : vector<8x64xf32>
    %205 = tpu.matmul %203, %204, %cst_123 {dimension_numbers = #tpu.dot_dimension_numbers<[1], [0], [0], [1], [0, 0, 1, 1], [], []>} : vector<8x32xf32>, vector<32x64xf32>, vector<8x64xf32> -> vector<8x64xf32>
    %206 = arith.mulf %205, %205 : vector<8x64xf32>
    %207 = arith.mulf %205, %206 : vector<8x64xf32>
    %cst_124 = arith.constant 4.471500e-02 : f32
    %208 = vector.broadcast %cst_124 : f32 to vector<8x64xf32>
    %209 = arith.mulf %208, %207 : vector<8x64xf32>
    %210 = arith.addf %205, %209 : vector<8x64xf32>
    %cst_125 = arith.constant 0.797884583 : f32
    %211 = vector.broadcast %cst_125 : f32 to vector<8x64xf32>
    %212 = arith.mulf %211, %210 : vector<8x64xf32>
    %213 = math.tanh %212 : vector<8x64xf32>
    %cst_126 = arith.constant 1.000000e+00 : f32
    %214 = vector.broadcast %cst_126 : f32 to vector<8x64xf32>
    %215 = arith.addf %214, %213 : vector<8x64xf32>
    %cst_127 = arith.constant 5.000000e-01 : f32
    %216 = vector.broadcast %cst_127 : f32 to vector<8x64xf32>
    %217 = arith.mulf %216, %215 : vector<8x64xf32>
    %218 = arith.mulf %205, %217 : vector<8x64xf32>
    %c0_128 = arith.constant 0 : index
    %c0_129 = arith.constant 0 : index
    %219 = vector.load %arg12[%c0_128, %c0_129] : memref<32x64xf32, #tpu.memory_space<vmem>>, vector<32x64xf32>
    %cst_130 = arith.constant dense<0.000000e+00> : vector<8x64xf32>
    %220 = tpu.matmul %203, %219, %cst_130 {dimension_numbers = #tpu.dot_dimension_numbers<[1], [0], [0], [1], [0, 0, 1, 1], [], []>} : vector<8x32xf32>, vector<32x64xf32>, vector<8x64xf32> -> vector<8x64xf32>
    %221 = arith.mulf %218, %220 : vector<8x64xf32>
    %c0_131 = arith.constant 0 : index
    %c0_132 = arith.constant 0 : index
    %222 = vector.load %arg13[%c0_131, %c0_132] : memref<64x32xf32, #tpu.memory_space<vmem>>, vector<64x32xf32>
    %cst_133 = arith.constant dense<0.000000e+00> : vector<8x32xf32>
    %223 = tpu.matmul %221, %222, %cst_133 {dimension_numbers = #tpu.dot_dimension_numbers<[1], [0], [0], [1], [0, 0, 1, 1], [], []>} : vector<8x64xf32>, vector<64x32xf32>, vector<8x32xf32> -> vector<8x32xf32>
    %224 = arith.addf %190, %223 : vector<8x32xf32>
    %225 = arith.mulf %224, %224 : vector<8x32xf32>
    %cst_134 = arith.constant dense<0.000000e+00> : vector<8xf32>
    %226 = vector.multi_reduction <add>, %225, %cst_134 [1] : vector<8x32xf32> to vector<8xf32>
    %227 = vector.shape_cast %226 : vector<8xf32> to vector<8x1xf32>
    %cst_135 = arith.constant 3.200000e+01 : f32
    %228 = vector.broadcast %cst_135 : f32 to vector<8x1xf32>
    %229 = arith.divf %227, %228 : vector<8x1xf32>
    %cst_136 = arith.constant 9.99999997E-7 : f32
    %230 = vector.broadcast %cst_136 : f32 to vector<8x1xf32>
    %231 = arith.addf %229, %230 : vector<8x1xf32>
    %232 = math.rsqrt %231 : vector<8x1xf32>
    %233 = vector.broadcast %232 : vector<8x1xf32> to vector<8x32xf32>
    %234 = arith.mulf %224, %233 : vector<8x32xf32>
    %c0_137 = arith.constant 0 : index
    %c0_138 = arith.constant 0 : index
    %235 = vector.load %arg14[%c0_137, %c0_138] : memref<1x32xf32, #tpu.memory_space<vmem>>, vector<1x32xf32>
    %236 = vector.broadcast %235 : vector<1x32xf32> to vector<8x32xf32>
    %237 = arith.mulf %234, %236 : vector<8x32xf32>
    %238 = vector.extract_strided_slice %237 {offsets = [0, 0], sizes = [1, 32], strides = [1, 1]} : vector<8x32xf32> to vector<1x32xf32>
    %239 = vector.extract_strided_slice %127 {offsets = [0, 0], sizes = [1, 32], strides = [1, 1]} : vector<8x32xf32> to vector<1x32xf32>
    %240 = arith.subf %238, %239 : vector<1x32xf32>
    %241 = arith.fptosi %240 : vector<1x32xf32> to vector<1x32xi32>
    %242 = arith.sitofp %241 : vector<1x32xi32> to vector<1x32xf32>
    %243 = vector.broadcast %242 : vector<1x32xf32> to vector<8x32xf32>
    %244 = arith.addf %237, %243 : vector<8x32xf32>
    %245 = arith.mulf %9, %9 : vector<8x32xf32>
    %cst_139 = arith.constant dense<0.000000e+00> : vector<8xf32>
    %246 = vector.multi_reduction <add>, %245, %cst_139 [1] : vector<8x32xf32> to vector<8xf32>
    %247 = vector.shape_cast %246 : vector<8xf32> to vector<8x1xf32>
    %cst_140 = arith.constant 3.200000e+01 : f32
    %248 = vector.broadcast %cst_140 : f32 to vector<8x1xf32>
    %249 = arith.divf %247, %248 : vector<8x1xf32>
    %cst_141 = arith.constant 9.99999997E-7 : f32
    %250 = vector.broadcast %cst_141 : f32 to vector<8x1xf32>
    %251 = arith.addf %249, %250 : vector<8x1xf32>
    %252 = math.rsqrt %251 : vector<8x1xf32>
    %253 = vector.broadcast %252 : vector<8x1xf32> to vector<8x32xf32>
    %254 = arith.mulf %9, %253 : vector<8x32xf32>
    %c0_142 = arith.constant 0 : index
    %c0_143 = arith.constant 0 : index
    %255 = vector.load %arg15[%c0_142, %c0_143] : memref<1x32xf32, #tpu.memory_space<vmem>>, vector<1x32xf32>
    %256 = vector.broadcast %255 : vector<1x32xf32> to vector<8x32xf32>
    %257 = arith.mulf %254, %256 : vector<8x32xf32>
    %cst_144 = arith.constant 0.000000e+00 : f32
    %258 = vector.broadcast %cst_144 : f32 to vector<8x32xf32>
    %c0_145 = arith.constant 0 : index
    %c0_146 = arith.constant 0 : index
    %259 = vector.load %arg16[%c0_145, %c0_146] : memref<32x32xf32, #tpu.memory_space<vmem>>, vector<32x16xf32>
    %cst_147 = arith.constant dense<0.000000e+00> : vector<8x16xf32>
    %260 = tpu.matmul %257, %259, %cst_147 {dimension_numbers = #tpu.dot_dimension_numbers<[1], [0], [0], [1], [0, 0, 1, 1], [], []>} : vector<8x32xf32>, vector<32x16xf32>, vector<8x16xf32> -> vector<8x16xf32>
    %c0_148 = arith.constant 0 : index
    %c0_149 = arith.constant 0 : index
    %261 = vector.load %arg17[%c0_148, %c0_149] : memref<32x32xf32, #tpu.memory_space<vmem>>, vector<32x16xf32>
    %cst_150 = arith.constant dense<0.000000e+00> : vector<8x16xf32>
    %262 = tpu.matmul %257, %261, %cst_150 {dimension_numbers = #tpu.dot_dimension_numbers<[1], [0], [0], [1], [0, 0, 1, 1], [], []>} : vector<8x32xf32>, vector<32x16xf32>, vector<8x16xf32> -> vector<8x16xf32>
    %c0_151 = arith.constant 0 : index
    %c0_152 = arith.constant 0 : index
    %263 = vector.load %arg18[%c0_151, %c0_152] : memref<32x32xf32, #tpu.memory_space<vmem>>, vector<32x16xf32>
    %cst_153 = arith.constant dense<0.000000e+00> : vector<8x16xf32>
    %264 = tpu.matmul %257, %263, %cst_153 {dimension_numbers = #tpu.dot_dimension_numbers<[1], [0], [0], [1], [0, 0, 1, 1], [], []>} : vector<8x32xf32>, vector<32x16xf32>, vector<8x16xf32> -> vector<8x16xf32>
    %cst_154 = arith.constant dense<0.000000e+00> : vector<8x8xf32>
    %265 = tpu.matmul %260, %262, %cst_154 {dimension_numbers = #tpu.dot_dimension_numbers<[1], [1], [0], [0], [0, 0, 1, 0], [], []>} : vector<8x16xf32>, vector<8x16xf32>, vector<8x8xf32> -> vector<8x8xf32>
    %c0_155 = arith.constant 0 : index
    %c0_156 = arith.constant 0 : index
    %c0_157 = arith.constant 0 : index
    %266 = vector.load %arg4[%c0_155, %c0_156, %c0_157] : memref<2x8x8xf32, #tpu.memory_space<vmem>>, vector<1x8x8xf32>
    %267 = vector.shape_cast %266 : vector<1x8x8xf32> to vector<8x8xf32>
    %268 = arith.addf %265, %267 : vector<8x8xf32>
    %cst_158 = arith.constant dense<0xFF800000> : vector<8xf32>
    %269 = vector.multi_reduction <maximumf>, %268, %cst_158 [1] : vector<8x8xf32> to vector<8xf32>
    %270 = vector.shape_cast %269 : vector<8xf32> to vector<8x1xf32>
    %271 = vector.broadcast %270 : vector<8x1xf32> to vector<8x8xf32>
    %272 = arith.subf %268, %271 : vector<8x8xf32>
    %273 = math.exp %272 : vector<8x8xf32>
    %cst_159 = arith.constant dense<0.000000e+00> : vector<8xf32>
    %274 = vector.multi_reduction <add>, %273, %cst_159 [1] : vector<8x8xf32> to vector<8xf32>
    %275 = vector.shape_cast %274 : vector<8xf32> to vector<8x1xf32>
    %276 = tpu.reciprocal %275 {approx = true} : vector<8x1xf32> -> vector<8x1xf32>
    %277 = vector.broadcast %276 : vector<8x1xf32> to vector<8x8xf32>
    %278 = arith.mulf %273, %277 : vector<8x8xf32>
    %cst_160 = arith.constant dense<0.000000e+00> : vector<8x16xf32>
    %279 = tpu.matmul %278, %264, %cst_160 {dimension_numbers = #tpu.dot_dimension_numbers<[1], [0], [0], [1], [0, 0, 1, 1], [], []>} : vector<8x8xf32>, vector<8x16xf32>, vector<8x16xf32> -> vector<8x16xf32>
    %c0_161 = arith.constant 0 : index
    %c0_162 = arith.constant 0 : index
    %280 = vector.load %arg19[%c0_161, %c0_162] : memref<32x32xf32, #tpu.memory_space<vmem>>, vector<16x32xf32>
    %cst_163 = arith.constant dense<0.000000e+00> : vector<8x32xf32>
    %281 = tpu.matmul %279, %280, %cst_163 {dimension_numbers = #tpu.dot_dimension_numbers<[1], [0], [0], [1], [0, 0, 1, 1], [], []>} : vector<8x16xf32>, vector<16x32xf32>, vector<8x32xf32> -> vector<8x32xf32>
    %282 = arith.addf %258, %281 : vector<8x32xf32>
    %c0_164 = arith.constant 0 : index
    %c16_165 = arith.constant 16 : index
    %283 = vector.load %arg16[%c0_164, %c16_165] : memref<32x32xf32, #tpu.memory_space<vmem>>, vector<32x16xf32>
    %cst_166 = arith.constant dense<0.000000e+00> : vector<8x16xf32>
    %284 = tpu.matmul %257, %283, %cst_166 {dimension_numbers = #tpu.dot_dimension_numbers<[1], [0], [0], [1], [0, 0, 1, 1], [], []>} : vector<8x32xf32>, vector<32x16xf32>, vector<8x16xf32> -> vector<8x16xf32>
    %c0_167 = arith.constant 0 : index
    %c16_168 = arith.constant 16 : index
    %285 = vector.load %arg17[%c0_167, %c16_168] : memref<32x32xf32, #tpu.memory_space<vmem>>, vector<32x16xf32>
    %cst_169 = arith.constant dense<0.000000e+00> : vector<8x16xf32>
    %286 = tpu.matmul %257, %285, %cst_169 {dimension_numbers = #tpu.dot_dimension_numbers<[1], [0], [0], [1], [0, 0, 1, 1], [], []>} : vector<8x32xf32>, vector<32x16xf32>, vector<8x16xf32> -> vector<8x16xf32>
    %c0_170 = arith.constant 0 : index
    %c16_171 = arith.constant 16 : index
    %287 = vector.load %arg18[%c0_170, %c16_171] : memref<32x32xf32, #tpu.memory_space<vmem>>, vector<32x16xf32>
    %cst_172 = arith.constant dense<0.000000e+00> : vector<8x16xf32>
    %288 = tpu.matmul %257, %287, %cst_172 {dimension_numbers = #tpu.dot_dimension_numbers<[1], [0], [0], [1], [0, 0, 1, 1], [], []>} : vector<8x32xf32>, vector<32x16xf32>, vector<8x16xf32> -> vector<8x16xf32>
    %cst_173 = arith.constant dense<0.000000e+00> : vector<8x8xf32>
    %289 = tpu.matmul %284, %286, %cst_173 {dimension_numbers = #tpu.dot_dimension_numbers<[1], [1], [0], [0], [0, 0, 1, 0], [], []>} : vector<8x16xf32>, vector<8x16xf32>, vector<8x8xf32> -> vector<8x8xf32>
    %c1_174 = arith.constant 1 : index
    %c0_175 = arith.constant 0 : index
    %c0_176 = arith.constant 0 : index
    %290 = vector.load %arg4[%c1_174, %c0_175, %c0_176] : memref<2x8x8xf32, #tpu.memory_space<vmem>>, vector<1x8x8xf32>
    %291 = vector.shape_cast %290 : vector<1x8x8xf32> to vector<8x8xf32>
    %292 = arith.addf %289, %291 : vector<8x8xf32>
    %cst_177 = arith.constant dense<0xFF800000> : vector<8xf32>
    %293 = vector.multi_reduction <maximumf>, %292, %cst_177 [1] : vector<8x8xf32> to vector<8xf32>
    %294 = vector.shape_cast %293 : vector<8xf32> to vector<8x1xf32>
    %295 = vector.broadcast %294 : vector<8x1xf32> to vector<8x8xf32>
    %296 = arith.subf %292, %295 : vector<8x8xf32>
    %297 = math.exp %296 : vector<8x8xf32>
    %cst_178 = arith.constant dense<0.000000e+00> : vector<8xf32>
    %298 = vector.multi_reduction <add>, %297, %cst_178 [1] : vector<8x8xf32> to vector<8xf32>
    %299 = vector.shape_cast %298 : vector<8xf32> to vector<8x1xf32>
    %300 = tpu.reciprocal %299 {approx = true} : vector<8x1xf32> -> vector<8x1xf32>
    %301 = vector.broadcast %300 : vector<8x1xf32> to vector<8x8xf32>
    %302 = arith.mulf %297, %301 : vector<8x8xf32>
    %cst_179 = arith.constant dense<0.000000e+00> : vector<8x16xf32>
    %303 = tpu.matmul %302, %288, %cst_179 {dimension_numbers = #tpu.dot_dimension_numbers<[1], [0], [0], [1], [0, 0, 1, 1], [], []>} : vector<8x8xf32>, vector<8x16xf32>, vector<8x16xf32> -> vector<8x16xf32>
    %c16_180 = arith.constant 16 : index
    %c0_181 = arith.constant 0 : index
    %304 = vector.load %arg19[%c16_180, %c0_181] : memref<32x32xf32, #tpu.memory_space<vmem>>, vector<16x32xf32>
    %cst_182 = arith.constant dense<0.000000e+00> : vector<8x32xf32>
    %305 = tpu.matmul %303, %304, %cst_182 {dimension_numbers = #tpu.dot_dimension_numbers<[1], [0], [0], [1], [0, 0, 1, 1], [], []>} : vector<8x16xf32>, vector<16x32xf32>, vector<8x32xf32> -> vector<8x32xf32>
    %306 = arith.addf %282, %305 : vector<8x32xf32>
    %307 = arith.addf %9, %306 : vector<8x32xf32>
    %308 = arith.mulf %307, %307 : vector<8x32xf32>
    %cst_183 = arith.constant dense<0.000000e+00> : vector<8xf32>
    %309 = vector.multi_reduction <add>, %308, %cst_183 [1] : vector<8x32xf32> to vector<8xf32>
    %310 = vector.shape_cast %309 : vector<8xf32> to vector<8x1xf32>
    %cst_184 = arith.constant 3.200000e+01 : f32
    %311 = vector.broadcast %cst_184 : f32 to vector<8x1xf32>
    %312 = arith.divf %310, %311 : vector<8x1xf32>
    %cst_185 = arith.constant 9.99999997E-7 : f32
    %313 = vector.broadcast %cst_185 : f32 to vector<8x1xf32>
    %314 = arith.addf %312, %313 : vector<8x1xf32>
    %315 = math.rsqrt %314 : vector<8x1xf32>
    %316 = vector.broadcast %315 : vector<8x1xf32> to vector<8x32xf32>
    %317 = arith.mulf %307, %316 : vector<8x32xf32>
    %c0_186 = arith.constant 0 : index
    %c0_187 = arith.constant 0 : index
    %318 = vector.load %arg20[%c0_186, %c0_187] : memref<1x32xf32, #tpu.memory_space<vmem>>, vector<1x32xf32>
    %319 = vector.broadcast %318 : vector<1x32xf32> to vector<8x32xf32>
    %320 = arith.mulf %317, %319 : vector<8x32xf32>
    %cst_188 = arith.constant 0.000000e+00 : f32
    %321 = vector.broadcast %cst_188 : f32 to vector<8x32xf32>
    %c0_189 = arith.constant 0 : index
    %c0_190 = arith.constant 0 : index
    %322 = vector.load %arg21[%c0_189, %c0_190] : memref<32x32xf32, #tpu.memory_space<vmem>>, vector<32x16xf32>
    %cst_191 = arith.constant dense<0.000000e+00> : vector<8x16xf32>
    %323 = tpu.matmul %320, %322, %cst_191 {dimension_numbers = #tpu.dot_dimension_numbers<[1], [0], [0], [1], [0, 0, 1, 1], [], []>} : vector<8x32xf32>, vector<32x16xf32>, vector<8x16xf32> -> vector<8x16xf32>
    %c0_192 = arith.constant 0 : index
    %c0_193 = arith.constant 0 : index
    %324 = vector.load %arg22[%c0_192, %c0_193] : memref<32x32xf32, #tpu.memory_space<vmem>>, vector<32x16xf32>
    %cst_194 = arith.constant dense<0.000000e+00> : vector<8x16xf32>
    %325 = tpu.matmul %244, %324, %cst_194 {dimension_numbers = #tpu.dot_dimension_numbers<[1], [0], [0], [1], [0, 0, 1, 1], [], []>} : vector<8x32xf32>, vector<32x16xf32>, vector<8x16xf32> -> vector<8x16xf32>
    %c0_195 = arith.constant 0 : index
    %c0_196 = arith.constant 0 : index
    %326 = vector.load %arg23[%c0_195, %c0_196] : memref<32x32xf32, #tpu.memory_space<vmem>>, vector<32x16xf32>
    %cst_197 = arith.constant dense<0.000000e+00> : vector<8x16xf32>
    %327 = tpu.matmul %244, %326, %cst_197 {dimension_numbers = #tpu.dot_dimension_numbers<[1], [0], [0], [1], [0, 0, 1, 1], [], []>} : vector<8x32xf32>, vector<32x16xf32>, vector<8x16xf32> -> vector<8x16xf32>
    %cst_198 = arith.constant dense<0.000000e+00> : vector<8x8xf32>
    %328 = tpu.matmul %323, %325, %cst_198 {dimension_numbers = #tpu.dot_dimension_numbers<[1], [1], [0], [0], [0, 0, 1, 0], [], []>} : vector<8x16xf32>, vector<8x16xf32>, vector<8x8xf32> -> vector<8x8xf32>
    %cst_199 = arith.constant dense<0xFF800000> : vector<8xf32>
    %329 = vector.multi_reduction <maximumf>, %328, %cst_199 [1] : vector<8x8xf32> to vector<8xf32>
    %330 = vector.shape_cast %329 : vector<8xf32> to vector<8x1xf32>
    %331 = vector.broadcast %330 : vector<8x1xf32> to vector<8x8xf32>
    %332 = arith.subf %328, %331 : vector<8x8xf32>
    %333 = math.exp %332 : vector<8x8xf32>
    %cst_200 = arith.constant dense<0.000000e+00> : vector<8xf32>
    %334 = vector.multi_reduction <add>, %333, %cst_200 [1] : vector<8x8xf32> to vector<8xf32>
    %335 = vector.shape_cast %334 : vector<8xf32> to vector<8x1xf32>
    %336 = tpu.reciprocal %335 {approx = true} : vector<8x1xf32> -> vector<8x1xf32>
    %337 = vector.broadcast %336 : vector<8x1xf32> to vector<8x8xf32>
    %338 = arith.mulf %333, %337 : vector<8x8xf32>
    %cst_201 = arith.constant dense<0.000000e+00> : vector<8x16xf32>
    %339 = tpu.matmul %338, %327, %cst_201 {dimension_numbers = #tpu.dot_dimension_numbers<[1], [0], [0], [1], [0, 0, 1, 1], [], []>} : vector<8x8xf32>, vector<8x16xf32>, vector<8x16xf32> -> vector<8x16xf32>
    %c0_202 = arith.constant 0 : index
    %c0_203 = arith.constant 0 : index
    %340 = vector.load %arg24[%c0_202, %c0_203] : memref<32x32xf32, #tpu.memory_space<vmem>>, vector<16x32xf32>
    %cst_204 = arith.constant dense<0.000000e+00> : vector<8x32xf32>
    %341 = tpu.matmul %339, %340, %cst_204 {dimension_numbers = #tpu.dot_dimension_numbers<[1], [0], [0], [1], [0, 0, 1, 1], [], []>} : vector<8x16xf32>, vector<16x32xf32>, vector<8x32xf32> -> vector<8x32xf32>
    %342 = arith.addf %321, %341 : vector<8x32xf32>
    %c0_205 = arith.constant 0 : index
    %c16_206 = arith.constant 16 : index
    %343 = vector.load %arg21[%c0_205, %c16_206] : memref<32x32xf32, #tpu.memory_space<vmem>>, vector<32x16xf32>
    %cst_207 = arith.constant dense<0.000000e+00> : vector<8x16xf32>
    %344 = tpu.matmul %320, %343, %cst_207 {dimension_numbers = #tpu.dot_dimension_numbers<[1], [0], [0], [1], [0, 0, 1, 1], [], []>} : vector<8x32xf32>, vector<32x16xf32>, vector<8x16xf32> -> vector<8x16xf32>
    %c0_208 = arith.constant 0 : index
    %c16_209 = arith.constant 16 : index
    %345 = vector.load %arg22[%c0_208, %c16_209] : memref<32x32xf32, #tpu.memory_space<vmem>>, vector<32x16xf32>
    %cst_210 = arith.constant dense<0.000000e+00> : vector<8x16xf32>
    %346 = tpu.matmul %244, %345, %cst_210 {dimension_numbers = #tpu.dot_dimension_numbers<[1], [0], [0], [1], [0, 0, 1, 1], [], []>} : vector<8x32xf32>, vector<32x16xf32>, vector<8x16xf32> -> vector<8x16xf32>
    %c0_211 = arith.constant 0 : index
    %c16_212 = arith.constant 16 : index
    %347 = vector.load %arg23[%c0_211, %c16_212] : memref<32x32xf32, #tpu.memory_space<vmem>>, vector<32x16xf32>
    %cst_213 = arith.constant dense<0.000000e+00> : vector<8x16xf32>
    %348 = tpu.matmul %244, %347, %cst_213 {dimension_numbers = #tpu.dot_dimension_numbers<[1], [0], [0], [1], [0, 0, 1, 1], [], []>} : vector<8x32xf32>, vector<32x16xf32>, vector<8x16xf32> -> vector<8x16xf32>
    %cst_214 = arith.constant dense<0.000000e+00> : vector<8x8xf32>
    %349 = tpu.matmul %344, %346, %cst_214 {dimension_numbers = #tpu.dot_dimension_numbers<[1], [1], [0], [0], [0, 0, 1, 0], [], []>} : vector<8x16xf32>, vector<8x16xf32>, vector<8x8xf32> -> vector<8x8xf32>
    %cst_215 = arith.constant dense<0xFF800000> : vector<8xf32>
    %350 = vector.multi_reduction <maximumf>, %349, %cst_215 [1] : vector<8x8xf32> to vector<8xf32>
    %351 = vector.shape_cast %350 : vector<8xf32> to vector<8x1xf32>
    %352 = vector.broadcast %351 : vector<8x1xf32> to vector<8x8xf32>
    %353 = arith.subf %349, %352 : vector<8x8xf32>
    %354 = math.exp %353 : vector<8x8xf32>
    %cst_216 = arith.constant dense<0.000000e+00> : vector<8xf32>
    %355 = vector.multi_reduction <add>, %354, %cst_216 [1] : vector<8x8xf32> to vector<8xf32>
    %356 = vector.shape_cast %355 : vector<8xf32> to vector<8x1xf32>
    %357 = tpu.reciprocal %356 {approx = true} : vector<8x1xf32> -> vector<8x1xf32>
    %358 = vector.broadcast %357 : vector<8x1xf32> to vector<8x8xf32>
    %359 = arith.mulf %354, %358 : vector<8x8xf32>
    %cst_217 = arith.constant dense<0.000000e+00> : vector<8x16xf32>
    %360 = tpu.matmul %359, %348, %cst_217 {dimension_numbers = #tpu.dot_dimension_numbers<[1], [0], [0], [1], [0, 0, 1, 1], [], []>} : vector<8x8xf32>, vector<8x16xf32>, vector<8x16xf32> -> vector<8x16xf32>
    %c16_218 = arith.constant 16 : index
    %c0_219 = arith.constant 0 : index
    %361 = vector.load %arg24[%c16_218, %c0_219] : memref<32x32xf32, #tpu.memory_space<vmem>>, vector<16x32xf32>
    %cst_220 = arith.constant dense<0.000000e+00> : vector<8x32xf32>
    %362 = tpu.matmul %360, %361, %cst_220 {dimension_numbers = #tpu.dot_dimension_numbers<[1], [0], [0], [1], [0, 0, 1, 1], [], []>} : vector<8x16xf32>, vector<16x32xf32>, vector<8x32xf32> -> vector<8x32xf32>
    %363 = arith.addf %342, %362 : vector<8x32xf32>
    %364 = arith.addf %307, %363 : vector<8x32xf32>
    %365 = arith.mulf %364, %364 : vector<8x32xf32>
    %cst_221 = arith.constant dense<0.000000e+00> : vector<8xf32>
    %366 = vector.multi_reduction <add>, %365, %cst_221 [1] : vector<8x32xf32> to vector<8xf32>
    %367 = vector.shape_cast %366 : vector<8xf32> to vector<8x1xf32>
    %cst_222 = arith.constant 3.200000e+01 : f32
    %368 = vector.broadcast %cst_222 : f32 to vector<8x1xf32>
    %369 = arith.divf %367, %368 : vector<8x1xf32>
    %cst_223 = arith.constant 9.99999997E-7 : f32
    %370 = vector.broadcast %cst_223 : f32 to vector<8x1xf32>
    %371 = arith.addf %369, %370 : vector<8x1xf32>
    %372 = math.rsqrt %371 : vector<8x1xf32>
    %373 = vector.broadcast %372 : vector<8x1xf32> to vector<8x32xf32>
    %374 = arith.mulf %364, %373 : vector<8x32xf32>
    %c0_224 = arith.constant 0 : index
    %c0_225 = arith.constant 0 : index
    %375 = vector.load %arg25[%c0_224, %c0_225] : memref<1x32xf32, #tpu.memory_space<vmem>>, vector<1x32xf32>
    %376 = vector.broadcast %375 : vector<1x32xf32> to vector<8x32xf32>
    %377 = arith.mulf %374, %376 : vector<8x32xf32>
    %c0_226 = arith.constant 0 : index
    %c0_227 = arith.constant 0 : index
    %378 = vector.load %arg26[%c0_226, %c0_227] : memref<32x64xf32, #tpu.memory_space<vmem>>, vector<32x64xf32>
    %cst_228 = arith.constant dense<0.000000e+00> : vector<8x64xf32>
    %379 = tpu.matmul %377, %378, %cst_228 {dimension_numbers = #tpu.dot_dimension_numbers<[1], [0], [0], [1], [0, 0, 1, 1], [], []>} : vector<8x32xf32>, vector<32x64xf32>, vector<8x64xf32> -> vector<8x64xf32>
    %380 = arith.mulf %379, %379 : vector<8x64xf32>
    %381 = arith.mulf %379, %380 : vector<8x64xf32>
    %cst_229 = arith.constant 4.471500e-02 : f32
    %382 = vector.broadcast %cst_229 : f32 to vector<8x64xf32>
    %383 = arith.mulf %382, %381 : vector<8x64xf32>
    %384 = arith.addf %379, %383 : vector<8x64xf32>
    %cst_230 = arith.constant 0.797884583 : f32
    %385 = vector.broadcast %cst_230 : f32 to vector<8x64xf32>
    %386 = arith.mulf %385, %384 : vector<8x64xf32>
    %387 = math.tanh %386 : vector<8x64xf32>
    %cst_231 = arith.constant 1.000000e+00 : f32
    %388 = vector.broadcast %cst_231 : f32 to vector<8x64xf32>
    %389 = arith.addf %388, %387 : vector<8x64xf32>
    %cst_232 = arith.constant 5.000000e-01 : f32
    %390 = vector.broadcast %cst_232 : f32 to vector<8x64xf32>
    %391 = arith.mulf %390, %389 : vector<8x64xf32>
    %392 = arith.mulf %379, %391 : vector<8x64xf32>
    %c0_233 = arith.constant 0 : index
    %c0_234 = arith.constant 0 : index
    %393 = vector.load %arg27[%c0_233, %c0_234] : memref<32x64xf32, #tpu.memory_space<vmem>>, vector<32x64xf32>
    %cst_235 = arith.constant dense<0.000000e+00> : vector<8x64xf32>
    %394 = tpu.matmul %377, %393, %cst_235 {dimension_numbers = #tpu.dot_dimension_numbers<[1], [0], [0], [1], [0, 0, 1, 1], [], []>} : vector<8x32xf32>, vector<32x64xf32>, vector<8x64xf32> -> vector<8x64xf32>
    %395 = arith.mulf %392, %394 : vector<8x64xf32>
    %c0_236 = arith.constant 0 : index
    %c0_237 = arith.constant 0 : index
    %396 = vector.load %arg28[%c0_236, %c0_237] : memref<64x32xf32, #tpu.memory_space<vmem>>, vector<64x32xf32>
    %cst_238 = arith.constant dense<0.000000e+00> : vector<8x32xf32>
    %397 = tpu.matmul %395, %396, %cst_238 {dimension_numbers = #tpu.dot_dimension_numbers<[1], [0], [0], [1], [0, 0, 1, 1], [], []>} : vector<8x64xf32>, vector<64x32xf32>, vector<8x32xf32> -> vector<8x32xf32>
    %398 = arith.addf %364, %397 : vector<8x32xf32>
    %399 = arith.mulf %398, %398 : vector<8x32xf32>
    %cst_239 = arith.constant dense<0.000000e+00> : vector<8xf32>
    %400 = vector.multi_reduction <add>, %399, %cst_239 [1] : vector<8x32xf32> to vector<8xf32>
    %401 = vector.shape_cast %400 : vector<8xf32> to vector<8x1xf32>
    %cst_240 = arith.constant 3.200000e+01 : f32
    %402 = vector.broadcast %cst_240 : f32 to vector<8x1xf32>
    %403 = arith.divf %401, %402 : vector<8x1xf32>
    %cst_241 = arith.constant 9.99999997E-7 : f32
    %404 = vector.broadcast %cst_241 : f32 to vector<8x1xf32>
    %405 = arith.addf %403, %404 : vector<8x1xf32>
    %406 = math.rsqrt %405 : vector<8x1xf32>
    %407 = vector.broadcast %406 : vector<8x1xf32> to vector<8x32xf32>
    %408 = arith.mulf %398, %407 : vector<8x32xf32>
    %c0_242 = arith.constant 0 : index
    %c0_243 = arith.constant 0 : index
    %409 = vector.load %arg29[%c0_242, %c0_243] : memref<1x32xf32, #tpu.memory_space<vmem>>, vector<1x32xf32>
    %410 = vector.broadcast %409 : vector<1x32xf32> to vector<8x32xf32>
    %411 = arith.mulf %408, %410 : vector<8x32xf32>
    %c0_244 = arith.constant 0 : index
    %c0_245 = arith.constant 0 : index
    %c0_246 = arith.constant 0 : index
    %412 = vector.load %arg30[%c0_244, %c0_245, %c0_246] : memref<1x8x32xf32, #tpu.memory_space<vmem>>, vector<1x8x32xf32>
    %413 = vector.shape_cast %412 : vector<1x8x32xf32> to vector<8x32xf32>
    %414 = vector.shape_cast %411 : vector<8x32xf32> to vector<1x8x32xf32>
    tpu.vector_store %arg30[%c0_244, %c0_245, %c0_246], %414 {strides = array<i32>} : memref<1x8x32xf32, #tpu.memory_space<vmem>>, vector<1x8x32xf32>,
    return
  }
  func.func @transform_0(%arg0: i32) -> (i32, i32, i32) {
    %c0_i32 = arith.constant 0 : i32
    %c0_i32_0 = arith.constant 0 : i32
    %c0_i32_1 = arith.constant 0 : i32
    return %arg0, %c0_i32, %c0_i32_0 : i32, i32, i32
  }
  func.func @transform_1(%arg0: i32) -> (i32, i32) {
    %c0_i32 = arith.constant 0 : i32
    %c0_i32_0 = arith.constant 0 : i32
    %c0_i32_1 = arith.constant 0 : i32
    return %c0_i32, %c0_i32_0 : i32, i32
  }
  func.func @transform_2(%arg0: i32) -> (i32, i32, i32) {
    %c0_i32 = arith.constant 0 : i32
    %c0_i32_0 = arith.constant 0 : i32
    %c0_i32_1 = arith.constant 0 : i32
    %c0_i32_2 = arith.constant 0 : i32
    return %c0_i32, %c0_i32_0, %c0_i32_1 : i32, i32, i32
  }
  func.func @transform_3(%arg0: i32) -> (i32, i32, i32) {
    %c0_i32 = arith.constant 0 : i32
    %c0_i32_0 = arith.constant 0 : i32
    %c0_i32_1 = arith.constant 0 : i32
    %c0_i32_2 = arith.constant 0 : i32
    return %c0_i32, %c0_i32_0, %c0_i32_1 : i32, i32, i32
  }
  func.func @transform_4(%arg0: i32) -> (i32, i32) {
    %c0_i32 = arith.constant 0 : i32
    %c0_i32_0 = arith.constant 0 : i32
    %c0_i32_1 = arith.constant 0 : i32
    return %c0_i32, %c0_i32_0 : i32, i32
  }
  func.func @transform_5(%arg0: i32) -> (i32, i32) {
    %c0_i32 = arith.constant 0 : i32
    %c0_i32_0 = arith.constant 0 : i32
    %c0_i32_1 = arith.constant 0 : i32
    return %c0_i32, %c0_i32_0 : i32, i32
  }
  func.func @transform_6(%arg0: i32) -> (i32, i32) {
    %c0_i32 = arith.constant 0 : i32
    %c0_i32_0 = arith.constant 0 : i32
    %c0_i32_1 = arith.constant 0 : i32
    return %c0_i32, %c0_i32_0 : i32, i32
  }
  func.func @transform_7(%arg0: i32) -> (i32, i32) {
    %c0_i32 = arith.constant 0 : i32
    %c0_i32_0 = arith.constant 0 : i32
    %c0_i32_1 = arith.constant 0 : i32
    return %c0_i32, %c0_i32_0 : i32, i32
  }
  func.func @transform_8(%arg0: i32) -> (i32, i32) {
    %c0_i32 = arith.constant 0 : i32
    %c0_i32_0 = arith.constant 0 : i32
    %c0_i32_1 = arith.constant 0 : i32
    return %c0_i32, %c0_i32_0 : i32, i32
  }
  func.func @transform_9(%arg0: i32) -> (i32, i32) {
    %c0_i32 = arith.constant 0 : i32
    %c0_i32_0 = arith.constant 0 : i32
    %c0_i32_1 = arith.constant 0 : i32
    return %c0_i32, %c0_i32_0 : i32, i32
  }
  func.func @transform_10(%arg0: i32) -> (i32, i32) {
    %c0_i32 = arith.constant 0 : i32
    %c0_i32_0 = arith.constant 0 : i32
    %c0_i32_1 = arith.constant 0 : i32
    return %c0_i32, %c0_i32_0 : i32, i32
  }
  func.func @transform_11(%arg0: i32) -> (i32, i32) {
    %c0_i32 = arith.constant 0 : i32
    %c0_i32_0 = arith.constant 0 : i32
    %c0_i32_1 = arith.constant 0 : i32
    return %c0_i32, %c0_i32_0 : i32, i32
  }
  func.func @transform_12(%arg0: i32) -> (i32, i32) {
    %c0_i32 = arith.constant 0 : i32
    %c0_i32_0 = arith.constant 0 : i32
    %c0_i32_1 = arith.constant 0 : i32
    return %c0_i32, %c0_i32_0 : i32, i32
  }
  func.func @transform_13(%arg0: i32) -> (i32, i32) {
    %c0_i32 = arith.constant 0 : i32
    %c0_i32_0 = arith.constant 0 : i32
    %c0_i32_1 = arith.constant 0 : i32
    return %c0_i32, %c0_i32_0 : i32, i32
  }
  func.func @transform_14(%arg0: i32) -> (i32, i32) {
    %c0_i32 = arith.constant 0 : i32
    %c0_i32_0 = arith.constant 0 : i32
    %c0_i32_1 = arith.constant 0 : i32
    return %c0_i32, %c0_i32_0 : i32, i32
  }
  func.func @transform_15(%arg0: i32) -> (i32, i32) {
    %c0_i32 = arith.constant 0 : i32
    %c0_i32_0 = arith.constant 0 : i32
    %c0_i32_1 = arith.constant 0 : i32
    return %c0_i32, %c0_i32_0 : i32, i32
  }
  func.func @transform_16(%arg0: i32) -> (i32, i32) {
    %c0_i32 = arith.constant 0 : i32
    %c0_i32_0 = arith.constant 0 : i32
    %c0_i32_1 = arith.constant 0 : i32
    return %c0_i32, %c0_i32_0 : i32, i32
  }
  func.func @transform_17(%arg0: i32) -> (i32, i32) {
    %c0_i32 = arith.constant 0 : i32
    %c0_i32_0 = arith.constant 0 : i32
    %c0_i32_1 = arith.constant 0 : i32
    return %c0_i32, %c0_i32_0 : i32, i32
  }
  func.func @transform_18(%arg0: i32) -> (i32, i32) {
    %c0_i32 = arith.constant 0 : i32
    %c0_i32_0 = arith.constant 0 : i32
    %c0_i32_1 = arith.constant 0 : i32
    return %c0_i32, %c0_i32_0 : i32, i32
  }
  func.func @transform_19(%arg0: i32) -> (i32, i32) {
    %c0_i32 = arith.constant 0 : i32
    %c0_i32_0 = arith.constant 0 : i32
    %c0_i32_1 = arith.constant 0 : i32
    return %c0_i32, %c0_i32_0 : i32, i32
  }
  func.func @transform_20(%arg0: i32) -> (i32, i32) {
    %c0_i32 = arith.constant 0 : i32
    %c0_i32_0 = arith.constant 0 : i32
    %c0_i32_1 = arith.constant 0 : i32
    return %c0_i32, %c0_i32_0 : i32, i32
  }
  func.func @transform_21(%arg0: i32) -> (i32, i32) {
    %c0_i32 = arith.constant 0 : i32
    %c0_i32_0 = arith.constant 0 : i32
    %c0_i32_1 = arith.constant 0 : i32
    return %c0_i32, %c0_i32_0 : i32, i32
  }
  func.func @transform_22(%arg0: i32) -> (i32, i32) {
    %c0_i32 = arith.constant 0 : i32
    %c0_i32_0 = arith.constant 0 : i32
    %c0_i32_1 = arith.constant 0 : i32
    return %c0_i32, %c0_i32_0 : i32, i32
  }
  func.func @transform_23(%arg0: i32) -> (i32, i32) {
    %c0_i32 = arith.constant 0 : i32
    %c0_i32_0 = arith.constant 0 : i32
    %c0_i32_1 = arith.constant 0 : i32
    return %c0_i32, %c0_i32_0 : i32, i32
  }
  func.func @transform_24(%arg0: i32) -> (i32, i32) {
    %c0_i32 = arith.constant 0 : i32
    %c0_i32_0 = arith.constant 0 : i32
    %c0_i32_1 = arith.constant 0 : i32
    return %c0_i32, %c0_i32_0 : i32, i32
  }
  func.func @transform_25(%arg0: i32) -> (i32, i32) {
    %c0_i32 = arith.constant 0 : i32
    %c0_i32_0 = arith.constant 0 : i32
    %c0_i32_1 = arith.constant 0 : i32
    return %c0_i32, %c0_i32_0 : i32, i32
  }
  func.func @transform_26(%arg0: i32) -> (i32, i32) {
    %c0_i32 = arith.constant 0 : i32
    %c0_i32_0 = arith.constant 0 : i32
    %c0_i32_1 = arith.constant 0 : i32
    return %c0_i32, %c0_i32_0 : i32, i32
  }
  func.func @transform_27(%arg0: i32) -> (i32, i32) {
    %c0_i32 = arith.constant 0 : i32
    %c0_i32_0 = arith.constant 0 : i32
    %c0_i32_1 = arith.constant 0 : i32
    return %c0_i32, %c0_i32_0 : i32, i32
  }
  func.func @transform_28(%arg0: i32) -> (i32, i32) {
    %c0_i32 = arith.constant 0 : i32
    %c0_i32_0 = arith.constant 0 : i32
    %c0_i32_1 = arith.constant 0 : i32
    return %c0_i32, %c0_i32_0 : i32, i32
  }
  func.func @transform_29(%arg0: i32) -> (i32, i32, i32) {
    %c0_i32 = arith.constant 0 : i32
    %c0_i32_0 = arith.constant 0 : i32
    %c0_i32_1 = arith.constant 0 : i32
    return %arg0, %c0_i32, %c0_i32_0 : i32, i32, i32
  }
}

</mosaic_0001>

<bundles_post_ra>
// kernel: mt5_paraphrase_forward.1
= control target key start
LH: loop header
LB: loop body
LE: loop exit
PB: predicated region body
PF: predicated region fallthrough
CT: control target
= control target key end

     0   :  { %s3288_s6 = smov 1   ;;  %s3289_s10 = smov 2   ;;  %s4084_s0 = inlined_call_operand.smem [shape: u32[30], index: -1, kind: input, shape index: {}] }
   0x1   :  { %s3329_s5 = sld [smem:[%s4084_s0]]   ;;  %s3290_s14 = smov 3  }
   0x2   :  { %s3334_s9 = sld [smem:[%s4084_s0 + %s3288_s6]]   ;;  %s3291_s18 = smov 4  }
   0x3   :  { %s3339_s13 = sld [smem:[%s4084_s0 + %s3289_s10]]   ;;  %s3292_s22 = smov 5  }
   0x4   :  { %s3344_s17 = sld [smem:[%s4084_s0 + %s3290_s14]]   ;;  %s3293_s26 = smov 6  }
   0x5   :  { %s3349_s21 = sld [smem:[%s4084_s0 + %s3291_s18]]   ;;  %s3294_s30 = smov 7  }
   0x6   :  { %s3354_s25 = sld [smem:[%s4084_s0 + %s3292_s22]]   ;;  %s3295_s4 = smov 8  }
   0x7   :  { %4107 = sst [smem:[#allocation5_spill]] %s3329_s5  ;;  %s3296_s10 = smov 9  }
   0x8   :  { %4108 = sst [smem:[#allocation6_spill]] %s3334_s9  ;;  %s3297_s15 = smov 10  }
   0x9   :  { %4109 = sst [smem:[#allocation7_spill]] %s3339_s13  ;;  %s3298_s20 = smov 11  }
   0xa   :  { %4110 = sst [smem:[#allocation8_spill]] %s3344_s17  ;;  %s3300_s1 = smov 13  }
   0xb   :  { %s3359_s29 = sld [smem:[%s4084_s0 + %s3293_s26]]   ;;  %s3299_s26 = smov 12  }
   0xc   :  { %s3364_s3 = sld [smem:[%s4084_s0 + %s3294_s30]]   ;;  %s3301_s7 = smov 14  }
   0xd   :  { %s3369_s8 = sld [smem:[%s4084_s0 + %s3295_s4]]   ;;  %s3303_s22 = smov 16  }
   0xe   :  { %s3374_s14 = sld [smem:[%s4084_s0 + %s3296_s10]]   ;;  %s3304_s28 = smov 17  }
   0xf   :  { %s3379_s19 = sld [smem:[%s4084_s0 + %s3297_s15]]   ;;  %s3302_s15 = smov 15  }
  0x10   :  { %s3384_s24 = sld [smem:[%s4084_s0 + %s3298_s20]]  }
  0x11   :  { %s3389_s30 = sld [smem:[%s4084_s0 + %s3299_s26]]  }
  0x12   :  { %4111 = sst [smem:[#allocation9_spill]] %s3364_s3 }
  0x13   :  { %4112 = sst [smem:[#allocation10_spill]] %s3369_s8 }
  0x14   :  { %4113 = sst [smem:[#allocation11_spill]] %s3374_s14 }
  0x15   :  { %s3394_s6 = sld [smem:[%s4084_s0 + %s3300_s1]]  }
  0x16   :  { %s3399_s12 = sld [smem:[%s4084_s0 + %s3301_s7]]   ;;  %s3305_s7 = smov 18  }
  0x17   :  { %s3404_s20 = sld [smem:[%s4084_s0 + %s3302_s15]]   ;;  %s3306_s15 = smov 19  }
  0x18   :  { %s3409_s27 = sld [smem:[%s4084_s0 + %s3303_s22]]   ;;  %s3307_s22 = smov 20  }
  0x19   :  { %s3414_s4 = sld [smem:[%s4084_s0 + %s3304_s28]]   ;;  %s3308_s28 = smov 21  }
  0x1a   :  { %s3424_s17 = sld [smem:[%s4084_s0 + %s3306_s15]]   ;;  %s3310_s15 = smov 23  }
  0x1b   :  { %4114 = sst [smem:[#allocation12_spill]] %s3394_s6 }
  0x1c   :  { %4115 = sst [smem:[#allocation13_spill]] %s3399_s12 }
  0x1d   :  { %s3419_s6 = sld [smem:[%s4084_s0 + %s3305_s7]]   ;;  %s3309_s7 = smov 22  }
  0x1e   :  { %4116 = sst [smem:[#allocation14_spill]] %s3409_s27 }
  0x1f   :  { %4117 = sst [smem:[#allocation15_spill]] %s3414_s4 }
  0x20   :  { %4119 = sst [smem:[#allocation17_spill]] %s3424_s17 }
  0x21   :  { %s3429_s27 = sld [smem:[%s4084_s0 + %s3307_s22]]   ;;  %s3311_s22 = smov 24  }
  0x22   :  { %s3434_s4 = sld [smem:[%s4084_s0 + %s3308_s28]]   ;;  %s3312_s28 = smov 25  }
  0x23   :  { %4118 = sst [smem:[#allocation16_spill]] %s3419_s6 }
  0x24   :  { %s3439_s6 = sld [smem:[%s4084_s0 + %s3309_s7]]   ;;  %s3313_s7 = smov 26  }
  0x25   :  { %s3444_s17 = sld [smem:[%s4084_s0 + %s3310_s15]]   ;;  %s3314_s15 = smov 27  }
  0x27   :  { %4120 = sst [smem:[#allocation18_spill]] %s3429_s27 }
  0x28   :  { %4121 = sst [smem:[#allocation19_spill]] %s3434_s4 }
  0x29   :  { %s3449_s27 = sld [smem:[%s4084_s0 + %s3311_s22]]   ;;  %s3315_s22 = smov 28  }
  0x2a   :  { %4122 = sst [smem:[#allocation20_spill]] %s3439_s6 }
  0x2b   :  { %4123 = sst [smem:[#allocation21_spill]] %s3444_s17 }
  0x2c   :  { %s3454_s4 = sld [smem:[%s4084_s0 + %s3312_s28]]   ;;  %s3316_s28 = smov 29  }
  0x2d   :  { %s3459_s6 = sld [smem:[%s4084_s0 + %s3313_s7]]  }
  0x2e   :  { %s3464_s17 = sld [smem:[%s4084_s0 + %s3314_s15]]  }
  0x2f   :  { %4124 = sst [smem:[#allocation22_spill]] %s3449_s27 }
  0x30   :  { %s3469_s27 = sld [smem:[%s4084_s0 + %s3315_s22]]  }
  0x32   :  { %4125 = sst [smem:[#allocation23_spill]] %s3454_s4 }
  0x33   :  { %4126 = sst [smem:[#allocation24_spill]] %s3459_s6 }
  0x34   :  { %s3474_s4 = sld [smem:[%s4084_s0 + %s3316_s28]]  }
  0x35   :  { %64 = vsyncpa [#allocation3], 0 }
  0x36   :  { %66 = vsyncpa [#allocation3 + $0x1], 0  ;;  %s3476_s7 = smov 0   ;;  %s3478_s10 = smov 0  }
  0x37   :  { %s3480_s11 = smov 0   ;;  %s3482_s15 = smov 0  }
  0x38 LB: > { %s4127_s13 = sld [smem:[#allocation7_spill]]  ;;  %s3497_s0 = sadd.s32 4294967295, %s3286_s15   ;;  %s3274_s7 = sphi %s3476_s7, %s4150_s7   ;;  %s3286_s15 = sphi %s3482_s15, %s4153_s15   ;;  %s3282_s11 = sphi %s3480_s11, %s4152_s11   ;;  %s3278_s10 = sphi %s3478_s10, %s4151_s10  }
  0x39   : > { %s4128_s9 = sld [smem:[#allocation6_spill]]  ;;  %s2907_s16 = sadd.s32 4294967294, %s3286_s15  }
  0x3a   : > { %s4129_s8 = sld [smem:[#allocation10_spill]]  ;;  %s3501_s18 = sadd.s32 1, %s3286_s15  }
  0x3b   : > { %s4130_s6 = sld [smem:[#allocation24_spill]]  ;;  %s693_s22 = sadd.s32 1, %s3282_s11 }
  0x3c   : > { %s4131_s3 = sld [smem:[#allocation9_spill]]  ;;  %s690_s23 = ssub.s32 %s3286_s15, %s3501_s18 }
  0x3d   : > { %p703_p0 = scmp.ne.s32.totalorder %s3282_s11, %s3278_s10  ;;  %p691_p1 = scmp.eq.s32.totalorder %s690_s23, 0 }
  0x3e   : > { %p704_p2 = scmp.eq.s32.totalorder %s3497_s0, 1  ;;  %p709_p3 = scmp.ne.s32.totalorder %s3278_s10, %s3274_s7 }
  0x3f   : > { %p710_p4 = scmp.eq.s32.totalorder %s2907_s16, 1  ;;  %p2910_p7 = scmp.ge.s32.totalorder %s3286_s15, 1 }
  0x40   : > { %s3512_s26 = scalar_select %p691_p1, %s3282_s11, %s693_s22  }
  0x41   : > { %p3514_p5 = por %p704_p2, %p703_p0  ;;  %p3518_p6 = por %p710_p4, %p709_p3 }
  0x42   : > { %p820_p8 = scmp.lt.s32.totalorder %s3286_s15, 3 }
  0x44   : > { %p821_p9 = pnand %p2910_p7, %p820_p8 }
  0x45   : > { %s4134_s5 = sld [smem:[#allocation5_spill]] (!%p821_p9)  ;;  %p896_p10 = scmp.lt.s32.totalorder (!%p821_p9), %s3497_s0, 1 }
  0x46   : > { %824 = sbr.rel (%p821_p9) target bundleno = 6180 (0x1824), region = 136  ;;  %s4094_s23 = smov (!%p821_p9), 112  }
  0x47   : > { %s4135_s14 = sld [smem:[#allocation11_spill]] (!%p821_p9) }
  0x48   : > { %s4136_s12 = sld [smem:[#allocation13_spill]] (!%p821_p9) }
  0x4b   : > { %v918_v0 = vld [vmem:[%s4128_s9 + $0x38] sm:$0xff]  ;;  %v917_v1 = vld [vmem:[%s4128_s9 + $0x30] sm:$0xff]  ;;  %v3317_v2 = vmov 0   ;;  %s897_s2 = scalar_select %p896_p10, %s3497_s0, 1  ;;  %v916_v3 = vld [vmem:[%s4128_s9 + $0x28] sm:$0xff]  ;;  %v903_v10 = vlaneseq  ;;  %vm919_vm0 = vcmask 523264  }
  0x4c   : > { %3067 = vset.pattern.permute.xlu0 %v3317_v2  ;;  %931 = vmatpush.msra.mxu0 %v918_v0  ;;  %v915_v4 = vld [vmem:[%s4128_s9 + $0x20] sm:$0xff]  ;;  %v914_v6 = vld [vmem:[%s4128_s9 + $0x18] sm:$0xff]  ;;  %v913_v7 = vld [vmem:[%s4128_s9 + $0x10] sm:$0xff]  ;;  %v3318_v13 = vmov 0.0   ;;  %vm973_vm2 = vcmask 261120   ;;  %v3320_v31 = vmov 32.0  }
  0x4d   : > { %3078 = vset.pattern.permute.xlu2 %v3317_v2  ;;  %960 = vmatpush.msra.mxu1 %v918_v0  ;;  %s2989_s16 = sshll.u32 %s897_s2, 4  ;;  %v912_v8 = vld [vmem:[%s4128_s9 + $0x8] sm:$0xff]  ;;  %v911_v9 = vld [vmem:[%s4128_s9] sm:$0xff]  ;;  %v904_v11 = vand.u32 127, %v903_v10  ;;  %v3537_v15 = vld [vmem:[%s3359_s29 + $0x10] sm:$0xff]  ;;  %3166 = vrcp.f32 %v3320_v31  ;;  %vm1078_vm8 = vcmask 130048  }
  0x4e   : > { %932 = vmatpush.msra.mxu0 %v917_v1  ;;  %s900_s22 = scalar_lea.vmem %s4134_s5, %s2989_s16  ;;  %v3540_v16 = vld [vmem:[%s3359_s29 + $0x18] sm:$0xff]  ;;  %v3549_v20 = vld [vmem:[%s3359_s29] sm:$0xff]  ;;  %v3552_v21 = vld [vmem:[%s3359_s29 + $0x8] sm:$0xff]  ;;  %vm1105_vm9 = vcmask 64512   ;;  %s4137_s2 = sld [smem:[#allocation14_spill]] }
  0x4f   : > { %961 = vmatpush.msra.mxu1 %v917_v1  ;;  %v901_v5 = vld [vmem:[%s900_s22] sm:$0xff]  ;;  %v3068_v17 = vpack.i.bf16 %v3537_v15, %v3540_v16  ;;  %v902_v18 = vld [vmem:[%s900_s22 + $0x8] sm:$0xff]  ;;  %v3546_v19 = vld [vmem:[%s3354_s25 + $0x18] sm:$0xff]  ;;  %v3073_v23 = vpack.i.bf16 %v3549_v20, %v3552_v21  ;;  %s4138_s16 = sld [smem:[#allocation15_spill]] }
  0x50   : > { %933 = vmatpush.msra.mxu0 %v916_v3  ;;  %906 = vperm.xlu0 %3067, %v901_v5   ;;  %v3555_v22 = vld [vmem:[%s3354_s25 + $0x10] sm:$0xff]  ;;  %v3562_v24 = vld [vmem:[%s3354_s25 + $0x8] sm:$0xff]  ;;  %v3568_v26 = vld [vmem:[%s3354_s25] sm:$0xff]  ;;  %s4139_s22 = sld [smem:[#allocation8_spill]] }
  0x51   : > { %962 = vmatpush.msra.mxu1 %v916_v3  ;;  %3069 = vrot.lane.b32.xlu1 %v3068_v17, %s4094_s23  ;;  %v3079_v25 = vpack.i.bf16 %v3555_v22, %v3546_v19  ;;  %v3084_v27 = vpack.i.bf16 %v3568_v26, %v3562_v24  ;;  %v3594_v41 = vld [vmem:[%s4131_s3 + $0x18] sm:$0xff]  ;;  %v3603_v44 = vld [vmem:[%s4131_s3 + $0x10] sm:$0xff]  ;;  %v3610_v47 = vld [vmem:[%s4131_s3 + $0x8] sm:$0xff]  ;;  %s4144_s5 = sld [smem:[#allocation20_spill]] }
  0x52   : > { %934 = vmatpush.msra.mxu0 %v915_v4  ;;  %944 = vperm.xlu2 %3078, %v902_v18   ;;  %v3617_v49 = vld [vmem:[%s4131_s3] sm:$0xff]  ;;  %s4142_s3 = smov 112  }
  0x53   : > { %963 = vmatpush.msra.mxu1 %v915_v4  ;;  %1021 = vmatpush.msra.mxu3 %v3546_v19  ;;  %v3167_v34 = vpop.eup %3166  ;;  %v3638_v1 = vld [vmem:[%s3349_s21] ss:$0 sm:$0xff] }
  0x54   : > { %935 = vmatpush.msra.mxu0 %v914_v6  ;;  %v978_v36 = vmul.f32 32.0, %v3167_v34  ;;  %1069 = vmatpush.msra.mxu2 %v3594_v41  ;;  %vm982_vm4 = vweird.f32 %v3167_v34  ;;  %v3657_v10 = vld [vmem:[%s4127_s13] sm:$0xff] }
  0x55   : > { %964 = vmatpush.msra.mxu1 %v914_v6  ;;  %1022 = vmatpush.msra.mxu3 %v3555_v22 }
  0x56   : > { %936 = vmatpush.msra.mxu0 %v913_v7  ;;  %v979_v38 = vsub.f32 1.0, %v978_v36  ;;  %1070 = vmatpush.msra.mxu2 %v3603_v44 }
  0x57   : > { %965 = vmatpush.msra.mxu1 %v913_v7  ;;  %1023 = vmatpush.msra.mxu3 %v3562_v24 }
  0x58   : > { %937 = vmatpush.msra.mxu0 %v912_v8  ;;  %v980_v45 = vmul.f32 %v3167_v34, %v979_v38  ;;  %1071 = vmatpush.msra.mxu2 %v3610_v47 }
  0x59   : > { %966 = vmatpush.msra.mxu1 %v912_v8  ;;  %1024 = vmatpush.msra.mxu3 %v3568_v26 }
  0x5a   : > { %938 = vmatpush.msra.mxu0 %v911_v9  ;;  %3074 = vrot.lane.b32.xlu1 %v3073_v23, %s4094_s23  ;;  %v981_v50 = vadd.f32 %v3167_v34, %v980_v45 }
  0x5b   : > { %967 = vmatpush.msra.mxu1 %v911_v9  ;;  %3080 = vrot.lane.b32.xlu2 %v3079_v25, %s4094_s23  ;;  %v3089_v9 = vpack.i.bf16 %v3603_v44, %v3594_v41 }
  0x5c   : > { %1045 = vmatpush.msrb.mxu3 %v3540_v16  ;;  %1072 = vmatpush.msra.mxu2 %v3617_v49  ;;  %v3627_v54 = vsel %vm982_vm4, %v3167_v34, %v981_v50  ;;  %v3688_v50 = vld [vmem:[%s4129_s8 + $0x8] sm:$0xff] }
  0x5e   : > { %1046 = vmatpush.msrb.mxu3 %v3537_v15 }
  0x60   : > { %1047 = vmatpush.msrb.mxu3 %v3552_v21 }
  0x62   : > { %1048 = vmatpush.msrb.mxu3 %v3549_v20  ;;  %3085 = vrot.lane.b32.xlu1 %v3084_v27, %s4094_s23 }
  0xac   : > { %v945_v33 = vpop.permute.xlu2 %944 }
  0xad   : > { %vm946_vm3 = vcmp.eq.s32.totalorder %v945_v33, %v904_v11 }
  0xae   : > { %v2916_v39 = vsel %vm946_vm3, 1.0, %v3318_v13 }
  0xaf   : > { %2917 = vmatmul.msk.f32.vlgmr.msra.gmra.mxu1 %vm919_vm0, %v2916_v39 }
  0xb5   : > { %v3589_v37 = vpop.permute.xlu2 %3080 }
  0xb6   : > { %v3082_v40 = vunpack.i.l.bf16 %v3589_v37  ;;  %v3083_v42 = vunpack.i.h.bf16 %v3589_v37 }
  0xb8   : > { %1170 = vmatpush.msrb.mxu1 %v3082_v40 }
  0xba   : > { %1171 = vmatpush.msrb.mxu1 %v3083_v42 }
  0xc2   : > { %v907_v12 = vpop.permute.xlu0 %906 }
  0xc3   : > { %vm908_vm1 = vcmp.eq.s32.totalorder %v907_v12, %v904_v11  ;;  %v3585_v32 = vpop.permute.xlu1 %3069 }
  0xc4   : > { %v2914_v14 = vsel %vm908_vm1, 1.0, %v3318_v13  ;;  %v3071_v51 = vunpack.i.l.bf16 %v3585_v32  ;;  %v3072_v52 = vunpack.i.h.bf16 %v3585_v32 }
  0xc5   : > { %2915 = vmatmul.msk.f32.vlgmr.msra.gmra.mxu0 %vm919_vm0, %v2914_v14  ;;  %v3094_v14 = vpack.i.bf16 %v3617_v49, %v3610_v47 }
  0xc6   : > { %1206 = vmatpush.msrb.mxu2 %v3071_v51 }
  0xc8   : > { %1207 = vmatpush.msrb.mxu2 %v3072_v52 }
  0xcc   : > { %v3587_v35 = vpop.permute.xlu1 %3074 }
  0xcd   : > { %v3076_v53 = vunpack.i.l.bf16 %v3587_v35  ;;  %v3077_v55 = vunpack.i.h.bf16 %v3587_v35  ;;  %v3776_v35 = vld [vmem:[%s3384_s24 + $0x10] sm:$0xff] }
  0xcf   : > { %1208 = vmatpush.msrb.mxu2 %v3076_v53 }
  0xd1   : > { %1209 = vmatpush.msrb.mxu2 %v3077_v55 }
  0xd4   : > { %v3600_v43 = vpop.permute.xlu1 %3085 }
  0xd5   : > { %v3087_v46 = vunpack.i.l.bf16 %v3600_v43  ;;  %v3088_v48 = vunpack.i.h.bf16 %v3600_v43 }
  0xd7   : > { %1172 = vmatpush.msrb.mxu1 %v3087_v46 }
  0xd9   : > { %1173 = vmatpush.msrb.mxu1 %v3088_v48 }
 0x12c   : > { %v3664_v17 = vpop.f32.mrf.mxu1 }
 0x12d   : > { %v1498_v18 = vmul.f32 %v3664_v17, %v3664_v17 }
 0x12f   : > { %v1499_v23 = vsel %vm973_vm2, %v1498_v18, 0.0 }
 0x142   : > { %v3580_v28 = vpop.f32.mrf.mxu0 }
 0x143   : > { %v972_v29 = vmul.f32 %v3580_v28, %v3580_v28 }
 0x145   : > { %v974_v30 = vsel %vm973_vm2, %v972_v29, 0.0 }
 0x146   : > { %975 = vadd.xlane.f32.xlu0 %v974_v30 }
 0x15a   : > { %3090 = vrot.lane.b32.xlu0 %v3089_v9, %s4094_s23 }
 0x1b9   : > { %v976_v56 = vpop.xlane.xlu0 %975 }
 0x1ba   : > { %v984_v57 = vmul.f32 %v3627_v54, %v976_v56 }
 0x1bc   : > { %v985_v58 = vadd.f32 1e-06, %v984_v57 }
 0x1be   : > { %3168 = vrsqrt.f32 %v985_v58  ;;  %vm992_vm6 = vweird.f32 %v985_v58 }
 0x1c4   : > { %v3169_v59 = vpop.eup %3168 }
 0x1c5   : > { %v987_v60 = vmul.f32 %v3169_v59, %v985_v58  ;;  %vm993_vm5 = vweird.f32 %v3169_v59 }
 0x1c6   : > { %vm994_vm7 = vmor %vm992_vm6, %vm993_vm5 }
 0x1c7   : > { %v988_v61 = vmul.f32 %v3169_v59, %v987_v60 }
 0x1c9   : > { %v989_v62 = vmul.f32 0.5, %v988_v61 }
 0x1cb   : > { %v990_v63 = vsub.f32 1.5, %v989_v62 }
 0x1cc   : > { %v3669_v25 = vpop.permute.xlu0 %3090 }
 0x1cd   : > { %v991_v0 = vmul.f32 %v3169_v59, %v990_v63  ;;  %v3093_v27 = vunpack.i.h.bf16 %v3669_v25  ;;  %v3092_v29 = vunpack.i.l.bf16 %v3669_v25 }
 0x1cf   : > { %v995_v2 = vsel %vm994_vm7, %v3169_v59, %v991_v0  ;;  %v3695_v0 = vld [vmem:[%s4129_s8] sm:$0xff] }
 0x1d0   : > { %v3641_v3 = vmul.f32 %v995_v2, %v3580_v28 }
 0x1d2   : > { %v1001_v4 = vmul.f32 %v3638_v1, %v3641_v3 }
 0x1d4   : > { %2918 = vmatmul.msk.f32.vlgmr.msra.gmra.mxu3 %vm973_vm2, %v1001_v4  ;;  %2920 = vmatmul.msk.f32.vlgmr.msra.gmra.mxu2 %vm973_vm2, %v1001_v4 }
 0x1d5   : > { %2924 = vmatmul.msk.f32.vlgmr.msrb.gmra.mxu1 %vm973_vm2, %v1001_v4 }
 0x1dc   : > { %2919 = vmatmul.msk.f32.vlgmr.msrb.gmra.mxu3 %vm973_vm2, %v1001_v4  ;;  %2925 = vmatmul.msk.f32.vlgmr.msrb.gmra.mxu2 %vm973_vm2, %v1001_v4 }
 0x252   : > { %v1175_v59 = vpop.f32.mrf.mxu1 }
 0x257   : > { %v1026_v5 = vpop.f32.mrf.mxu3  ;;  %v1074_v6 = vpop.f32.mrf.mxu2 }
 0x258   : > { %1135 = vmatpush.msrb.mxu0 %v1074_v6 }
 0x25f   : > { %v1050_v7 = vpop.f32.mrf.mxu3  ;;  %v1211_v8 = vpop.f32.mrf.mxu2 }
 0x260   : > { %2921 = vmatpush.xpose.msk.msra.mxu3 %vm1078_vm8, %v1050_v7  ;;  %2928 = vmatpush.xpose.msk.msra.mxu0 %vm1078_vm8, %v1211_v8 }
 0x263   : > { %2922 = vmatmul.msk.f32.vlgmr.msra.gmra.mxu3 %vm1078_vm8, %v1026_v5 }
 0x264   : > { %1242 = vmatpush.msrb.mxu3 %v3092_v29 }
 0x266   : > { %1243 = vmatpush.msrb.mxu3 %v3093_v27 }
 0x2e6   : > { %v1102_v11 = vpop.f32.mrf.mxu3 }
 0x2e7   : > { %v1103_v12 = vadd.f32 %v1102_v11, %v3657_v10 }
 0x2e9   : > { %v1106_v13 = vsel %vm1105_vm9, %v1103_v12, -inf }
 0x2ea   : > { %1107 = vmax.xlane.f32.xlu2 %v1106_v13 }
 0x302   : > { %3095 = vrot.lane.b32.xlu2 %v3094_v14, %s4094_s23 }
 0x32b   : > { %1500 = vadd.xlane.f32.xlu2 %v1499_v23 }
 0x35d   : > { %v1108_v30 = vpop.xlane.xlu2 %1107 }
 0x35e   : > { %v1109_v31 = vsub.f32 %v1103_v12, %v1108_v30 }
 0x360   : > { %v1110_v33 = vmul.f32 1.442695, %v1109_v31  ;;  %v3716_v31 = vld [vmem:[%s4129_s8 + $0x18] sm:$0xff] }
 0x361   : > { %1331 = vmatpush.msra.mxu2 %v3716_v31 }
 0x362   : > { %3170 = vpow2.f32 %v1110_v33  ;;  %v3719_v33 = vld [vmem:[%s4129_s8 + $0x10] sm:$0xff] }
 0x363   : > { %1332 = vmatpush.msra.mxu2 %v3719_v33 }
 0x365   : > { %v3677_v34 = vpop.permute.xlu2 %3095 }
 0x366   : > { %v3098_v36 = vunpack.i.h.bf16 %v3677_v34  ;;  %v3097_v38 = vunpack.i.l.bf16 %v3677_v34 }
 0x368   : > { %v3171_v39 = vpop.eup %3170  ;;  %1244 = vmatpush.msrb.mxu3 %v3097_v38 }
 0x369   : > { %v1112_v45 = vsel %vm1105_vm9, %v3171_v39, 0.0 }
 0x36a   : > { %1113 = vadd.xlane.f32.xlu1 %v1112_v45  ;;  %1245 = vmatpush.msrb.mxu3 %v3098_v36  ;;  %v3727_v45 = vld [vmem:[%s3389_s30 + $0x30] sm:$0xff] }
 0x36b   : > { %2926 = vmatmul.msk.f32.vlgmr.msrb.gmra.mxu3 %vm973_vm2, %v1001_v4 }
 0x36c   : > { %1354 = vmatpush.msra.mxu3 %v3688_v50 }
 0x36e   : > { %1355 = vmatpush.msra.mxu3 %v3695_v0 }
 0x370   : > { %1531 = vmatpush.msrb.mxu3 %v3546_v19 }
 0x372   : > { %1532 = vmatpush.msrb.mxu3 %v3555_v22  ;;  %v3705_v22 = vld [vmem:[%s4127_s13 + $0x8] sm:$0xff] }
 0x374   : > { %1533 = vmatpush.msrb.mxu3 %v3562_v24 }
 0x376   : > { %1534 = vmatpush.msrb.mxu3 %v3568_v26 }
 0x39e   : > { %v1501_v61 = vpop.xlane.xlu2 %1500 }
 0x39f   : > { %v1502_v62 = vmul.f32 %v1501_v61, %v3627_v54 }
 0x3a1   : > { %v1503_v63 = vadd.f32 1e-06, %v1502_v62 }
 0x3a3   : > { %vm1510_vm10 = vweird.f32 %v1503_v63 }
 0x3dd   : > { %v1114_v56 = vpop.xlane.xlu1 %1113 }
 0x3de   : > { %3172 = vrcp.f32 %v1114_v56  ;;  %v3731_v56 = vld [vmem:[%s3389_s30 + $0x28] sm:$0xff] }
 0x3df   : > { %3174 = vrsqrt.f32 %v1503_v63 }
 0x3e4   : > { %v3173_v57 = vpop.eup %3172 }
 0x3e5   : > { %v1116_v58 = vmul.f32 %v3173_v57, %v3171_v39  ;;  %v3175_v2 = vpop.eup %3174  ;;  %v3723_v39 = vld [vmem:[%s3389_s30 + $0x38] sm:$0xff]  ;;  %v3735_v57 = vld [vmem:[%s3389_s30 + $0x20] sm:$0xff] }
 0x3e6   : > { %v1505_v4 = vmul.f32 %v3175_v2, %v1503_v63  ;;  %vm1511_vm11 = vweird.f32 %v3175_v2  ;;  %1463 = vmatpush.msrb.mxu2 %v3723_v39 }
 0x3e7   : > { %2923 = vmatmul.msk.f32.vlgmr.msrb.gmra.mxu0 %vm1105_vm9, %v1116_v58  ;;  %vm1512_vm12 = vmor %vm1510_vm10, %vm1511_vm11  ;;  %v3739_v58 = vld [vmem:[%s3389_s30 + $0x18] sm:$0xff] }
 0x3e8   : > { %v1506_v5 = vmul.f32 %v3175_v2, %v1505_v4  ;;  %1464 = vmatpush.msrb.mxu2 %v3727_v45 }
 0x3ea   : > { %v1507_v6 = vmul.f32 0.5, %v1506_v5  ;;  %1465 = vmatpush.msrb.mxu2 %v3731_v56 }
 0x3ec   : > { %v1508_v7 = vsub.f32 1.5, %v1507_v6  ;;  %1466 = vmatpush.msrb.mxu2 %v3735_v57 }
 0x3ee   : > { %v1247_v60 = vpop.f32.mrf.mxu3  ;;  %v1509_v8 = vmul.f32 %v3175_v2, %v1508_v7  ;;  %1467 = vmatpush.msrb.mxu2 %v3739_v58 }
 0x3ef   : > { %2929 = vmatmul.msk.f32.vlgmr.msra.gmra.mxu0 %vm1078_vm8, %v1175_v59  ;;  %1307 = vmatpush.msra.mxu1 %v1247_v60  ;;  %v3743_v59 = vld [vmem:[%s3389_s30 + $0x10] sm:$0xff]  ;;  %v3747_v60 = vld [vmem:[%s3389_s30 + $0x8] sm:$0xff] }
 0x3f0   : > { %v1513_v9 = vsel %vm1512_vm12, %v3175_v2, %v1509_v8  ;;  %1468 = vmatpush.msrb.mxu2 %v3743_v59  ;;  %v3753_v2 = vld [vmem:[%s3389_s30] sm:$0xff] }
 0x3f1   : > { %v1514_v19 = vmul.f32 %v1513_v9, %v3664_v17  ;;  %v3788_v9 = vld [vmem:[%s3379_s19 + $0x18] sm:$0xff] }
 0x3f2   : > { %1469 = vmatpush.msrb.mxu2 %v3747_v60  ;;  %1402 = vmatpush.msrb.mxu0 %v3788_v9 }
 0x3f3   : > { %v3708_v24 = vmul.f32 %v3638_v1, %v1514_v19  ;;  %v3798_v19 = vld [vmem:[%s3379_s19 + $0x8] sm:$0xff] }
 0x3f4   : > { %1470 = vmatpush.msrb.mxu2 %v3753_v2 }
 0x464   : > { %v1137_v11 = vpop.f32.mrf.mxu0 }
 0x465   : > { %2932 = vmatmul.msk.f32.vlgmr.msra.gmra.mxu3 %vm1078_vm8, %v1137_v11  ;;  %v3793_v11 = vld [vmem:[%s3379_s19 + $0x10] sm:$0xff] }
 0x466   : > { %1403 = vmatpush.msrb.mxu0 %v3793_v11 }
 0x468   : > { %1404 = vmatpush.msrb.mxu0 %v3798_v19 }
 0x46c   : > { %v1275_v26 = vpop.f32.mrf.mxu0 }
 0x46d   : > { %v1276_v12 = vadd.f32 %v3705_v22, %v1275_v26  ;;  %2936 = vmatmul.msk.f32.vlgmr.msrb.gmra.mxu3 %vm973_vm2, %v3708_v24  ;;  %v3803_v26 = vld [vmem:[%s3379_s19] sm:$0xff] }
 0x46e   : > { %1405 = vmatpush.msrb.mxu0 %v3803_v26 }
 0x46f   : > { %v1278_v13 = vsel %vm1105_vm9, %v1276_v12, -inf }
 0x470   : > { %1279 = vmax.xlane.f32.xlu1 %v1278_v13  ;;  %1551 = vmatpush.msra.mxu0 %v3540_v16  ;;  %v3813_v16 = vld [vmem:[%s4135_s14] ss:$0 sm:$0xff]  ;;  %s3244_s14 = scalar_lea.hbm %s3474_s4, 16 }
 0x472   : > { %1552 = vmatpush.msra.mxu0 %v3537_v15 }
 0x474   : > { %1553 = vmatpush.msra.mxu0 %v3552_v21 }
 0x476   : > { %1554 = vmatpush.msra.mxu0 %v3549_v20 }
 0x4e3   : > { %v1280_v14 = vpop.xlane.xlu1 %1279 }
 0x4e4   : > { %v1281_v18 = vsub.f32 %v1276_v12, %v1280_v14 }
 0x4e6   : > { %v1282_v23 = vmul.f32 1.442695, %v1281_v18 }
 0x4e8   : > { %3176 = vpow2.f32 %v1282_v23  ;;  %v1357_v5 = vpop.f32.mrf.mxu3 }
 0x4ee   : > { %v3177_v1 = vpop.eup %3176 }
 0x4ef   : > { %v1284_v30 = vsel %vm1105_vm9, %v3177_v1, 0.0 }
 0x4f0   : > { %1285 = vadd.xlane.f32.xlu0 %v1284_v30  ;;  %v1536_v43 = vpop.f32.mrf.mxu3 }
 0x563   : > { %v1286_v61 = vpop.xlane.xlu0 %1285 }
 0x564   : > { %3178 = vrcp.f32 %v1286_v61 }
 0x56a   : > { %v3179_v62 = vpop.eup %3178 }
 0x56b   : > { %v1288_v63 = vmul.f32 %v3179_v62, %v3177_v1 }
 0x56d   : > { %2930 = vmatmul.msk.f32.vlgmr.msra.gmra.mxu1 %vm1105_vm9, %v1288_v63 }
 0x5ea   : > { %v1309_v4 = vpop.f32.mrf.mxu1 }
 0x5eb   : > { %2931 = vmatmul.msk.f32.vlgmr.msra.gmra.mxu2 %vm1078_vm8, %v1309_v4 }
 0x5ec   : > { %1671 = vmatpush.msra.mxu2 %v3071_v51 }
 0x5ee   : > { %1672 = vmatpush.msra.mxu2 %v3072_v52  ;;  %v3772_v52 = vld [vmem:[%s3384_s24 + $0x18] sm:$0xff] }
 0x5ef   : > { %1435 = vmatpush.msrb.mxu1 %v3772_v52 }
 0x5f0   : > { %1673 = vmatpush.msra.mxu2 %v3076_v53  ;;  %v3780_v53 = vld [vmem:[%s3384_s24 + $0x8] sm:$0xff] }
 0x5f1   : > { %1436 = vmatpush.msrb.mxu1 %v3776_v35 }
 0x5f2   : > { %1674 = vmatpush.msra.mxu2 %v3077_v55  ;;  %v3784_v55 = vld [vmem:[%s3384_s24] sm:$0xff] }
 0x5f3   : > { %1437 = vmatpush.msrb.mxu1 %v3780_v53 }
 0x5f5   : > { %1438 = vmatpush.msrb.mxu1 %v3784_v55 }
 0x5f7   : > { %1571 = vmatpush.msra.mxu1 %v3594_v41 }
 0x5f9   : > { %1572 = vmatpush.msra.mxu1 %v3603_v44 }
 0x5fb   : > { %1573 = vmatpush.msra.mxu1 %v3610_v47 }
 0x5fd   : > { %1574 = vmatpush.msra.mxu1 %v3617_v49 }
 0x66e   : > { %v1334_v6 = vpop.f32.mrf.mxu2 }
 0x66f   : > { %v1358_v7 = vadd.f32 %v1357_v5, %v1334_v6 }
 0x671   : > { %v3766_v8 = vadd.f32 %v1358_v7, %v3580_v28  ;;  %v1929_v7 = vld [vmem:[%s3404_s20] sm:$0xff] }
 0x673   : > { %v1361_v51 = vmul.f32 %v3766_v8, %v3766_v8 }
 0x675   : > { %v1362_v32 = vsel %vm973_vm2, %v1361_v51, 0.0 }
 0x676   : > { %1363 = vadd.xlane.f32.xlu1 %v1362_v32 }
 0x6e9   : > { %v1364_v41 = vpop.xlane.xlu1 %1363 }
 0x6ea   : > { %v1365_v44 = vmul.f32 %v1364_v41, %v3627_v54 }
 0x6ec   : > { %v1366_v12 = vadd.f32 1e-06, %v1365_v44 }
 0x6ee   : > { %3180 = vrsqrt.f32 %v1366_v12  ;;  %vm1373_vm14 = vweird.f32 %v1366_v12 }
 0x6f4   : > { %v3181_v47 = vpop.eup %3180 }
 0x6f5   : > { %v1368_v13 = vmul.f32 %v3181_v47, %v1366_v12  ;;  %vm1374_vm13 = vweird.f32 %v3181_v47 }
 0x6f6   : > { %vm1375_vm15 = vmor %vm1373_vm14, %vm1374_vm13 }
 0x6f7   : > { %v1369_v14 = vmul.f32 %v3181_v47, %v1368_v13  ;;  %v1958_v13 = vld [vmem:[%s4137_s2 + $0x10] sm:$0xff] }
 0x6f9   : > { %v1370_v18 = vmul.f32 0.5, %v1369_v14  ;;  %v1959_v14 = vld [vmem:[%s4137_s2 + $0x18] sm:$0xff] }
 0x6fb   : > { %v1371_v23 = vsub.f32 1.5, %v1370_v18  ;;  %v3099_v18 = vpack.i.bf16 %v1958_v13, %v1959_v14 }
 0x6fd   : > { %v1372_v49 = vmul.f32 %v3181_v47, %v1371_v23 }
 0x6ff   : > { %v1376_v15 = vsel %vm1375_vm15, %v3181_v47, %v1372_v49 }
 0x700   : > { %v1377_v21 = vmul.f32 %v1376_v15, %v3766_v8 }
 0x702   : > { %v1382_v1 = vmul.f32 %v3813_v16, %v1377_v21 }
 0x704   : > { %2933 = vmatmul.msk.f32.vlgmr.msrb.gmra.mxu0 %vm973_vm2, %v1382_v1  ;;  %2934 = vmatmul.msk.f32.vlgmr.msrb.gmra.mxu1 %vm973_vm2, %v1382_v1 }
 0x705   : > { %1651 = vmatpush.msrb.mxu1 %v3082_v40 }
 0x707   : > { %1652 = vmatpush.msrb.mxu1 %v3083_v42 }
 0x709   : > { %1653 = vmatpush.msrb.mxu1 %v3087_v46 }
 0x70b   : > { %1654 = vmatpush.msrb.mxu1 %v3088_v48 }
 0x70c   : > { %2937 = vmatmul.msk.f32.vlgmr.msra.gmra.mxu0 %vm973_vm2, %v3708_v24  ;;  %2938 = vmatmul.msk.f32.vlgmr.msra.gmra.mxu1 %vm973_vm2, %v3708_v24 }
 0x714   : > { %2942 = vmatmul.msk.f32.vlgmr.msrb.gmra.mxu1 %vm973_vm2, %v3708_v24 }
 0x781   : > { %v1407_v20 = vpop.f32.mrf.mxu0  ;;  %v1440_v40 = vpop.f32.mrf.mxu1 }
 0x782   : > { %v1410_v30 = vmul.f32 %v1407_v20, %v1407_v20 }
 0x784   : > { %v1411_v37 = vmul.f32 %v1410_v30, %v1407_v20 }
 0x786   : > { %v1412_v42 = vmul.f32 0.044715, %v1411_v37  ;;  %v1982_v37 = vld [vmem:[%s4138_s16 + $0x10] sm:$0xff] }
 0x788   : > { %v1413_v61 = vadd.f32 %v1412_v42, %v1407_v20  ;;  %v1957_v42 = vld [vmem:[%s4137_s2 + $0x8] sm:$0xff] }
 0x789   : > { %v1556_v62 = vpop.f32.mrf.mxu0  ;;  %v1576_v46 = vpop.f32.mrf.mxu1 }
 0x78a   : > { %v1414_v63 = vmul.f32 0.7978846, %v1413_v61  ;;  %2939 = vmatpush.xpose.msk.msra.mxu3 %vm1078_vm8, %v1556_v62  ;;  %1634 = vmatpush.msrb.mxu0 %v1576_v46  ;;  %v1956_v46 = vld [vmem:[%s4137_s2] sm:$0xff]  ;;  %s4141_s2 = sld [smem:[#allocation19_spill]] }
 0x78c   : > { %3182 = vtanh.f32 %v1414_v63  ;;  %v1981_v63 = vld [vmem:[%s4138_s16 + $0x8] sm:$0xff] }
 0x78d   : > { %2940 = vmatmul.msk.f32.vlgmr.msra.gmra.mxu3 %vm1078_vm8, %v1536_v43  ;;  %v3104_v43 = vpack.i.bf16 %v1956_v46, %v1957_v42 }
 0x78e   : > { %1691 = vmatpush.msrb.mxu3 %v3092_v29 }
 0x790   : > { %1692 = vmatpush.msrb.mxu3 %v3093_v27 }
 0x792   : > { %1693 = vmatpush.msrb.mxu3 %v3097_v38  ;;  %v3183_v48 = vpop.eup %3182 }
 0x793   : > { %v1416_v4 = vadd.f32 1.0, %v3183_v48  ;;  %v1980_v48 = vld [vmem:[%s4138_s16] sm:$0xff] }
 0x794   : > { %1694 = vmatpush.msrb.mxu3 %v3098_v36 }
 0x795   : > { %v1417_v5 = vmul.f32 0.5, %v1416_v4  ;;  %2944 = vmatmul.msk.f32.vlgmr.msrb.gmra.mxu3 %vm973_vm2, %v3708_v24 }
 0x796   : > { %1799 = vmatpush.msra.mxu3 %v3688_v50 }
 0x797   : > { %v1418_v29 = vmul.f32 %v1417_v5, %v1407_v20 }
 0x798   : > { %1800 = vmatpush.msra.mxu3 %v3695_v0 }
 0x799   : > { %v1443_v6 = vmul.f32 %v1440_v40, %v1418_v29  ;;  %v1983_v40 = vld [vmem:[%s4138_s16 + $0x18] sm:$0xff] }
 0x79a   : > { %v3119_v62 = vpack.i.bf16 %v1982_v37, %v1983_v40 }
 0x79b   : > { %2935 = vmatmul.msk.f32.vlgmr.msrb.gmra.mxu2 %vm919_vm0, %v1443_v6  ;;  %v3124_v6 = vpack.i.bf16 %v1980_v48, %v1981_v63 }
 0x79c   : > { %1776 = vmatpush.msrb.mxu2 %v3716_v31 }
 0x79e   : > { %1777 = vmatpush.msrb.mxu2 %v3719_v33 }
 0x7a3   : > { %2943 = vmatmul.msk.f32.vlgmr.msra.gmra.mxu2 %vm973_vm2, %v3708_v24 }
 0x7a4   : > { %1888 = vmatpush.msra.mxu2 %v3723_v39 }
 0x7a6   : > { %1889 = vmatpush.msra.mxu2 %v3727_v45 }
 0x7a8   : > { %1890 = vmatpush.msra.mxu2 %v3731_v56 }
 0x7aa   : > { %1891 = vmatpush.msra.mxu2 %v3735_v57  ;;  %v1656_v57 = vpop.f32.mrf.mxu1 }
 0x7ac   : > { %1892 = vmatpush.msra.mxu2 %v3739_v58  ;;  %v1932_v58 = vld [vmem:[%s3404_s20 + $0x18] sm:$0xff] }
 0x7ad   : > { %1948 = vmatpush.msrb.mxu3 %v1932_v58 }
 0x7ae   : > { %1893 = vmatpush.msra.mxu2 %v3743_v59  ;;  %v1931_v59 = vld [vmem:[%s3404_s20 + $0x10] sm:$0xff] }
 0x7af   : > { %1949 = vmatpush.msrb.mxu3 %v1931_v59 }
 0x7b0   : > { %1894 = vmatpush.msra.mxu2 %v3747_v60  ;;  %v3109_v60 = vpack.i.bf16 %v1931_v59, %v1932_v58 }
 0x7b2   : > { %1895 = vmatpush.msra.mxu2 %v3753_v2  ;;  %v1930_v2 = vld [vmem:[%s3404_s20 + $0x8] sm:$0xff]  ;;  %3110 = vrot.lane.b32.xlu2 %v3109_v60, %s4094_s23 }
 0x7b3   : > { %1950 = vmatpush.msrb.mxu3 %v1930_v2  ;;  %v3114_v51 = vpack.i.bf16 %v1929_v7, %v1930_v2 }
 0x7b5   : > { %1951 = vmatpush.msrb.mxu3 %v1929_v7 }
 0x810   : > { %v1602_v25 = vpop.f32.mrf.mxu3 }
 0x811   : > { %v1603_v27 = vadd.f32 %v1602_v25, %v3657_v10 }
 0x813   : > { %v1605_v34 = vsel %vm1105_vm9, %v1603_v27, -inf }
 0x814   : > { %1606 = vmax.xlane.f32.xlu1 %v1605_v34 }
 0x818   : > { %v1696_v36 = vpop.f32.mrf.mxu3 }
 0x819   : > { %1754 = vmatpush.msra.mxu1 %v1696_v36 }
 0x81b   : > { %1868 = vmatpush.msrb.mxu1 %v3772_v52  ;;  %v3160_v52 = vld [vmem:[%s4136_s12] ss:$0 sm:$0xff] }
 0x81d   : > { %1869 = vmatpush.msrb.mxu1 %v3776_v35  ;;  %v3884_v35 = vmul.f32 %v3160_v52, %v3641_v3 }
 0x81e   : > { %v3864_v38 = vpop.f32.mrf.mxu2 }
 0x81f   : > { %1870 = vmatpush.msrb.mxu1 %v3780_v53 }
 0x821   : > { %1871 = vmatpush.msrb.mxu1 %v3784_v55 }
 0x826   : > { %v1676_v50 = vpop.f32.mrf.mxu2 }
 0x827   : > { %2945 = vmatpush.xpose.msk.msra.mxu0 %vm1078_vm8, %v1676_v50 }
 0x887   : > { %v1607_v0 = vpop.xlane.xlu1 %1606 }
 0x888   : > { %v1608_v10 = vsub.f32 %v1603_v27, %v1607_v0 }
 0x88a   : > { %v1609_v24 = vmul.f32 1.442695, %v1608_v10  ;;  %v3111_v10 = vpop.permute.xlu2 %3110 }
 0x88c   : > { %3184 = vpow2.f32 %v1609_v24 }
 0x892   : > { %v3185_v31 = vpop.eup %3184 }
 0x893   : > { %v1611_v33 = vsel %vm1105_vm9, %v3185_v31, 0.0 }
 0x894   : > { %1612 = vadd.xlane.f32.xlu1 %v1611_v33  ;;  %v3112_v33 = vunpack.i.l.bf16 %v3111_v10 }
 0x907   : > { %v1613_v39 = vpop.xlane.xlu1 %1612 }
 0x908   : > { %3186 = vrcp.f32 %v1613_v39 }
 0x90e   : > { %v3187_v45 = vpop.eup %3186 }
 0x90f   : > { %v1615_v56 = vmul.f32 %v3187_v45, %v3185_v31 }
 0x911   : > { %2941 = vmatmul.msk.f32.vlgmr.msrb.gmra.mxu0 %vm1105_vm9, %v1615_v56  ;;  %v3113_v56 = vunpack.i.h.bf16 %v3111_v10 }
 0x912   : > { %1839 = vmatpush.msrb.mxu0 %v3788_v9 }
 0x914   : > { %1840 = vmatpush.msrb.mxu0 %v3793_v11 }
 0x916   : > { %1841 = vmatpush.msrb.mxu0 %v3798_v19 }
 0x918   : > { %1842 = vmatpush.msrb.mxu0 %v3803_v26 }
 0x919   : > { %2946 = vmatmul.msk.f32.vlgmr.msra.gmra.mxu0 %vm1078_vm8, %v1656_v57 }
 0x91a   : > { %1972 = vmatpush.msra.mxu0 %v1959_v14 }
 0x91c   : > { %1973 = vmatpush.msra.mxu0 %v1958_v13 }
 0x91e   : > { %1974 = vmatpush.msra.mxu0 %v1957_v42 }
 0x920   : > { %1975 = vmatpush.msra.mxu0 %v1956_v46 }
 0x98e   : > { %v1636_v32 = vpop.f32.mrf.mxu0 }
 0x98f   : > { %2949 = vmatmul.msk.f32.vlgmr.msra.gmra.mxu3 %vm1078_vm8, %v1636_v32 }
 0x996   : > { %v1722_v53 = vpop.f32.mrf.mxu0 }
 0x997   : > { %v1723_v55 = vadd.f32 %v3705_v22, %v1722_v53  ;;  %2953 = vmatmul.msk.f32.vlgmr.msrb.gmra.mxu3 %vm973_vm2, %v3884_v35 }
 0x999   : > { %v1725_v9 = vsel %vm1105_vm9, %v1723_v55, -inf }
 0x99a   : > { %1726 = vmax.xlane.f32.xlu1 %v1725_v9 }
 0xa0d   : > { %v1727_v11 = vpop.xlane.xlu1 %1726 }
 0xa0e   : > { %v1728_v19 = vsub.f32 %v1723_v55, %v1727_v11 }
 0xa10   : > { %v1729_v26 = vmul.f32 1.442695, %v1728_v19 }
 0xa12   : > { %3188 = vpow2.f32 %v1729_v26  ;;  %v1802_v23 = vpop.f32.mrf.mxu3 }
 0xa18   : > { %v3189_v41 = vpop.eup %3188 }
 0xa19   : > { %v1731_v44 = vsel %vm1105_vm9, %v3189_v41, 0.0 }
 0xa1a   : > { %1732 = vadd.xlane.f32.xlu1 %v1731_v44 }
 0xa33   : > { %3100 = vrot.lane.b32.xlu1 %v3099_v18, %s4094_s23 }
 0xa3b   : > { %3115 = vrot.lane.b32.xlu1 %v3114_v51, %s4094_s23 }
 0xa43   : > { %3120 = vrot.lane.b32.xlu1 %v3119_v62, %s4094_s23 }
 0xa4b   : > { %3125 = vrot.lane.b32.xlu1 %v3124_v6, %s4094_s23 }
 0xa8d   : > { %v1733_v3 = vpop.xlane.xlu1 %1732 }
 0xa8e   : > { %3190 = vrcp.f32 %v1733_v3  ;;  %v1953_v3 = vpop.f32.mrf.mxu3 }
 0xa94   : > { %v3191_v12 = vpop.eup %3190 }
 0xa95   : > { %v1735_v22 = vmul.f32 %v3191_v12, %v3189_v41 }
 0xa97   : > { %2947 = vmatmul.msk.f32.vlgmr.msra.gmra.mxu1 %vm1105_vm9, %v1735_v22 }
 0xa98   : > { %1996 = vmatpush.msra.mxu1 %v1983_v40 }
 0xa9a   : > { %1997 = vmatpush.msra.mxu1 %v1982_v37 }
 0xa9c   : > { %1998 = vmatpush.msra.mxu1 %v1981_v63 }
 0xa9e   : > { %1999 = vmatpush.msra.mxu1 %v1980_v48 }
 0xaa5   : > { %v3101_v30 = vpop.permute.xlu1 %3100 }
 0xaa6   : > { %v3102_v61 = vunpack.i.l.bf16 %v3101_v30 }
 0xaad   : > { %v3116_v45 = vpop.permute.xlu1 %3115 }
 0xaae   : > { %v3117_v57 = vunpack.i.l.bf16 %v3116_v45  ;;  %v3118_v58 = vunpack.i.h.bf16 %v3116_v45 }
 0xab5   : > { %v3121_v2 = vpop.permute.xlu1 %3120 }
 0xab6   : > { %v3122_v55 = vunpack.i.l.bf16 %v3121_v2  ;;  %v3123_v44 = vunpack.i.h.bf16 %v3121_v2  ;;  %v2337_v2 = vld [vmem:[%s4141_s2 + $0x10] sm:$0xff] }
 0xabd   : > { %v3126_v11 = vpop.permute.xlu1 %3125 }
 0xabe   : > { %v3127_v12 = vunpack.i.l.bf16 %v3126_v11  ;;  %v3128_v22 = vunpack.i.h.bf16 %v3126_v11 }
 0xb14   : > { %v1756_v47 = vpop.f32.mrf.mxu1 }
 0xb15   : > { %2948 = vmatmul.msk.f32.vlgmr.msrb.gmra.mxu2 %vm1078_vm8, %v1756_v47 }
 0xb16   : > { %2131 = vmatpush.msrb.mxu2 %v3102_v61 }
 0xb98   : > { %v1779_v49 = vpop.f32.mrf.mxu2 }
 0xb99   : > { %v1803_v15 = vadd.f32 %v1802_v23, %v1779_v49  ;;  %v2004_v49 = vld [vmem:[%s4139_s22] sm:$0xff] }
 0xb9b   : > { %v3898_v21 = vadd.f32 %v1803_v15, %v3664_v17  ;;  %v3103_v17 = vunpack.i.h.bf16 %v3101_v30 }
 0xb9d   : > { %v1806_v1 = vmul.f32 %v3898_v21, %v3898_v21  ;;  %2132 = vmatpush.msrb.mxu2 %v3103_v17 }
 0xb9f   : > { %v1807_v20 = vsel %vm973_vm2, %v1806_v1, 0.0 }
 0xba0   : > { %1808 = vadd.xlane.f32.xlu0 %v1807_v20 }
 0xbb4   : > { %3105 = vrot.lane.b32.xlu0 %v3104_v43, %s4094_s23  ;;  %s4140_s23 = sld [smem:[#allocation16_spill]] }
 0xc13   : > { %v1809_v4 = vpop.xlane.xlu0 %1808 }
 0xc14   : > { %v1810_v5 = vmul.f32 %v1809_v4, %v3627_v54  ;;  %v2066_v4 = vld [vmem:[%s4140_s23 + $0x8] sm:$0xff] }
 0xc16   : > { %v1811_v29 = vadd.f32 1e-06, %v1810_v5 }
 0xc18   : > { %3192 = vrsqrt.f32 %v1811_v29  ;;  %vm1818_vm3 = vweird.f32 %v1811_v29 }
 0xc1e   : > { %v3193_v25 = vpop.eup %3192 }
 0xc1f   : > { %v1813_v27 = vmul.f32 %v3193_v25, %v1811_v29  ;;  %vm1819_vm1 = vweird.f32 %v3193_v25 }
 0xc20   : > { %vm1820_vm4 = vmor %vm1818_vm3, %vm1819_vm1 }
 0xc21   : > { %v1814_v34 = vmul.f32 %v3193_v25, %v1813_v27 }
 0xc23   : > { %v1815_v36 = vmul.f32 0.5, %v1814_v34 }
 0xc25   : > { %v1816_v50 = vsub.f32 1.5, %v1815_v36 }
 0xc27   : > { %v1817_v0 = vmul.f32 %v3193_v25, %v1816_v50 }
 0xc29   : > { %v1821_v24 = vsel %vm1820_vm4, %v3193_v25, %v1817_v0  ;;  %v2962_v25 = vld [vmem:[%s4139_s22 + $0x8] sm:$0xff] }
 0xc2a   : > { %v1822_v31 = vmul.f32 %v1821_v24, %v3898_v21 }
 0xc2c   : > { %v1823_v39 = vmul.f32 %v3813_v16, %v1822_v31  ;;  %v3106_v16 = vpop.permute.xlu0 %3105 }
 0xc2d   : > { %v3108_v59 = vunpack.i.h.bf16 %v3106_v16  ;;  %v3107_v60 = vunpack.i.l.bf16 %v3106_v16 }
 0xc2e   : > { %2950 = vmatmul.msk.f32.vlgmr.msrb.gmra.mxu0 %vm973_vm2, %v1823_v39  ;;  %2951 = vmatmul.msk.f32.vlgmr.msrb.gmra.mxu1 %vm973_vm2, %v1823_v39 }
 0xc2f   : > { %2095 = vmatpush.msrb.mxu1 %v3112_v33  ;;  %2133 = vmatpush.msrb.mxu2 %v3107_v60  ;;  %v2338_v60 = vld [vmem:[%s4141_s2 + $0x18] sm:$0xff] }
 0xc31   : > { %2096 = vmatpush.msrb.mxu1 %v3113_v56  ;;  %2134 = vmatpush.msrb.mxu2 %v3108_v59 }
 0xc33   : > { %2097 = vmatpush.msrb.mxu1 %v3117_v57 }
 0xc35   : > { %2098 = vmatpush.msrb.mxu1 %v3118_v58 }
 0xc36   : > { %2954 = vmatmul.msk.f32.vlgmr.msra.gmra.mxu0 %vm973_vm2, %v3884_v35  ;;  %2955 = vmatmul.msk.f32.vlgmr.msra.gmra.mxu1 %vm973_vm2, %v3884_v35 }
 0xc3e   : > { %2959 = vmatmul.msk.f32.vlgmr.msrb.gmra.mxu1 %vm973_vm2, %v3884_v35 }
 0xcab   : > { %v1844_v7 = vpop.f32.mrf.mxu0  ;;  %v1873_v51 = vpop.f32.mrf.mxu1 }
 0xcac   : > { %v1847_v32 = vmul.f32 %v1844_v7, %v1844_v7 }
 0xcae   : > { %v1848_v52 = vmul.f32 %v1847_v32, %v1844_v7  ;;  %v3958_v32 = vld [vmem:[%s4141_s2] sm:$0xff] }
 0xcb0   : > { %v1849_v53 = vmul.f32 0.044715, %v1848_v52 }
 0xcb2   : > { %v1850_v9 = vadd.f32 %v1849_v53, %v1844_v7 }
 0xcb3   : > { %v1977_v19 = vpop.f32.mrf.mxu0  ;;  %v2001_v26 = vpop.f32.mrf.mxu1 }
 0xcb4   : > { %v1851_v41 = vmul.f32 0.7978846, %v1850_v9  ;;  %2956 = vmatpush.xpose.msk.msra.mxu3 %vm1078_vm8, %v1977_v19  ;;  %2060 = vmatpush.msrb.mxu0 %v2001_v26 }
 0xcb6   : > { %3194 = vtanh.f32 %v1851_v41 }
 0xcb7   : > { %2957 = vmatmul.msk.f32.vlgmr.msra.gmra.mxu3 %vm1078_vm8, %v1953_v3 }
 0xcb8   : > { %2167 = vmatpush.msrb.mxu3 %v3122_v55 }
 0xcba   : > { %2168 = vmatpush.msrb.mxu3 %v3123_v44  ;;  %v2238_v44 = vld [vmem:[%s4140_s23 + $0x18] sm:$0xff] }
 0xcbc   : > { %2169 = vmatpush.msrb.mxu3 %v3127_v12  ;;  %v3195_v47 = vpop.eup %3194 }
 0xcbd   : > { %v1853_v13 = vadd.f32 1.0, %v3195_v47 }
 0xcbe   : > { %2170 = vmatpush.msrb.mxu3 %v3128_v22 }
 0xcbf   : > { %v1854_v14 = vmul.f32 0.5, %v1853_v13  ;;  %2961 = vmatmul.msk.f32.vlgmr.msrb.gmra.mxu3 %vm973_vm2, %v3884_v35 }
 0xcc0   : > { %2279 = vmatpush.msra.mxu3 %v2066_v4  ;;  %v2365_v4 = vld [vmem:[%s4144_s5 + $0x18] sm:$0xff] }
 0xcc1   : > { %v1855_v18 = vmul.f32 %v1854_v14, %v1844_v7  ;;  %v3129_v7 = vpack.i.bf16 %v2337_v2, %v2338_v60 }
 0xcc3   : > { %v1876_v23 = vmul.f32 %v1873_v51, %v1855_v18  ;;  %v3955_v51 = vld [vmem:[%s4141_s2 + $0x8] sm:$0xff]  ;;  %s4143_s2 = sld [smem:[#allocation12_spill]] }
 0xcc4   : > { %v3134_v53 = vpack.i.bf16 %v3958_v32, %v3955_v51 }
 0xcc5   : > { %2952 = vmatmul.msk.f32.vlgmr.msra.gmra.mxu2 %vm919_vm0, %v1876_v23 }
 0xcc6   : > { %2256 = vmatpush.msra.mxu2 %v2238_v44 }
 0xccd   : > { %2960 = vmatmul.msk.f32.vlgmr.msrb.gmra.mxu2 %vm973_vm2, %v3884_v35  ;;  %v3935_v35 = vadd.f32 %v3864_v38, %v3766_v8  ;;  %v2100_v8 = vpop.f32.mrf.mxu1  ;;  %v2065_v38 = vld [vmem:[%s4140_s23] sm:$0xff] }
 0xcce   : > { %2280 = vmatpush.msra.mxu3 %v2065_v38  ;;  %v2362_v38 = vld [vmem:[%s4144_s5] sm:$0xff] }
 0xccf   : > { %v1476_v43 = vmul.f32 %v3935_v35, %v3935_v35 }
 0xcd1   : > { %v1477_v17 = vsel %vm973_vm2, %v1476_v43, 0.0 }
 0xd3a   : > { %v2028_v15 = vpop.f32.mrf.mxu3 }
 0xd3b   : > { %v2029_v1 = vadd.f32 %v2028_v15, %v2004_v49  ;;  %v3162_v15 = vld [vmem:[%s4143_s2] ss:$0 sm:$0xff]  ;;  %s4145_s2 = sld [smem:[#allocation18_spill]] }
 0xd3d   : > { %v2031_v20 = vsel %vm1105_vm9, %v2029_v1, -inf }
 0xd3e   : > { %2032 = vmax.xlane.f32.xlu0 %v2031_v20 }
 0xd42   : > { %v2172_v40 = vpop.f32.mrf.mxu3 }
 0xd43   : > { %2232 = vmatpush.msra.mxu1 %v2172_v40 }
 0xd45   : > { %2354 = vmatpush.msrb.mxu1 %v2338_v60 }
 0xd47   : > { %2355 = vmatpush.msrb.mxu1 %v2337_v2 }
 0xd48   : > { %v1897_v30 = vpop.f32.mrf.mxu2 }
 0xd49   : > { %v1900_v31 = vadd.f32 %v1897_v30, %v3898_v21  ;;  %2356 = vmatpush.msrb.mxu1 %v3955_v51 }
 0xd4b   : > { %v1901_v39 = vmul.f32 %v1900_v31, %v1900_v31  ;;  %2357 = vmatpush.msrb.mxu1 %v3958_v32 }
 0xd4d   : > { %v1902_v45 = vsel %vm973_vm2, %v1901_v39, 0.0 }
 0xd50   : > { %v2136_v37 = vpop.f32.mrf.mxu2 }
 0xd51   : > { %2963 = vmatpush.xpose.msk.msra.mxu0 %vm1078_vm8, %v2136_v37 }
 0xdb1   : > { %v2033_v42 = vpop.xlane.xlu0 %2032 }
 0xdb2   : > { %v2034_v61 = vsub.f32 %v2029_v1, %v2033_v42 }
 0xdb4   : > { %v2035_v62 = vmul.f32 1.442695, %v2034_v61 }
 0xdb6   : > { %3196 = vpow2.f32 %v2035_v62 }
 0xdbc   : > { %v3197_v46 = vpop.eup %3196 }
 0xdbd   : > { %v2037_v63 = vsel %vm1105_vm9, %v3197_v46, 0.0 }
 0xdbe   : > { %2038 = vadd.xlane.f32.xlu2 %v2037_v63 }
 0xdc6   : > { %1478 = vadd.xlane.f32.xlu2 %v1477_v17 }
 0xe31   : > { %v2039_v48 = vpop.xlane.xlu2 %2038 }
 0xe32   : > { %3198 = vrcp.f32 %v2039_v48 }
 0xe38   : > { %v3199_v5 = vpop.eup %3198 }
 0xe39   : > { %v2041_v29 = vmul.f32 %v3199_v5, %v3197_v46  ;;  %v1479_v56 = vpop.xlane.xlu2 %1478  ;;  %v2364_v5 = vld [vmem:[%s4144_s5 + $0x10] sm:$0xff] }
 0xe3a   : > { %v1480_v57 = vmul.f32 %v1479_v56, %v3627_v54 }
 0xe3b   : > { %2958 = vmatmul.msk.f32.vlgmr.msrb.gmra.mxu0 %vm1105_vm9, %v2041_v29  ;;  %v3149_v29 = vpack.i.bf16 %v2364_v5, %v2365_v4 }
 0xe3c   : > { %v1481_v58 = vadd.f32 1e-06, %v1480_v57 }
 0xe3e   : > { %vm1488_vm6 = vweird.f32 %v1481_v58 }
 0xe43   : > { %2964 = vmatmul.msk.f32.vlgmr.msra.gmra.mxu0 %vm1078_vm8, %v2100_v8  ;;  %v2363_v8 = vld [vmem:[%s4144_s5 + $0x8] sm:$0xff]  ;;  %s2986_s5 = sshll.u32 %s3497_s0, 3 }
 0xeb8   : > { %v2062_v6 = vpop.f32.mrf.mxu0 }
 0xeb9   : > { %2967 = vmatmul.msk.f32.vlgmr.msra.gmra.mxu3 %vm1078_vm8, %v2062_v6  ;;  %v3154_v6 = vpack.i.bf16 %v2362_v38, %v2363_v8 }
 0xec0   : > { %v2200_v27 = vpop.f32.mrf.mxu0 }
 0xec1   : > { %v2201_v34 = vadd.f32 %v2962_v25, %v2200_v27 }
 0xec3   : > { %v2203_v36 = vsel %vm1105_vm9, %v2201_v34, -inf }
 0xec4   : > { %2204 = vmax.xlane.f32.xlu1 %v2203_v36  ;;  %v2310_v36 = vld [vmem:[%s4145_s2 + $0x10] sm:$0xff] }
 0xf37   : > { %v2205_v50 = vpop.xlane.xlu1 %2204 }
 0xf38   : > { %v2206_v0 = vsub.f32 %v2201_v34, %v2205_v50  ;;  %v2311_v34 = vld [vmem:[%s4145_s2 + $0x18] sm:$0xff]  ;;  %v2309_v50 = vld [vmem:[%s4145_s2 + $0x8] sm:$0xff] }
 0xf39   : > { %2327 = vmatpush.msrb.mxu0 %v2311_v34 }
 0xf3a   : > { %v2207_v10 = vmul.f32 1.442695, %v2206_v0  ;;  %v2308_v0 = vld [vmem:[%s4145_s2] sm:$0xff]  ;;  %s4148_s2 = sld [smem:[#allocation23_spill]] }
 0xf3b   : > { %2328 = vmatpush.msrb.mxu0 %v2310_v36 }
 0xf3c   : > { %3200 = vpow2.f32 %v2207_v10  ;;  %v3139_v10 = vpack.i.bf16 %v2310_v36, %v2311_v34 }
 0xf3d   : > { %3202 = vrsqrt.f32 %v1481_v58  ;;  %2329 = vmatpush.msrb.mxu0 %v2309_v50 }
 0xf3e   : > { %3140 = vrot.lane.b32.xlu1 %v3139_v10, %s4142_s3 }
 0xf3f   : > { %2330 = vmatpush.msrb.mxu0 %v2308_v0 }
 0xf42   : > { %v3201_v24 = vpop.eup %3200 }
 0xf43   : > { %v2209_v33 = vsel %vm1105_vm9, %v3201_v24, 0.0  ;;  %v3203_v59 = vpop.eup %3202 }
 0xf44   : > { %2210 = vadd.xlane.f32.xlu0 %v2209_v33  ;;  %v1483_v21 = vmul.f32 %v3203_v59, %v1481_v58  ;;  %vm1489_vm5 = vweird.f32 %v3203_v59 }
 0xf45   : > { %vm1490_vm7 = vmor %vm1488_vm6, %vm1489_vm5 }
 0xf46   : > { %v1484_v19 = vmul.f32 %v3203_v59, %v1483_v21  ;;  %3150 = vrot.lane.b32.xlu1 %v3149_v29, %s4142_s3 }
 0xf48   : > { %v1485_v41 = vmul.f32 0.5, %v1484_v19 }
 0xf4a   : > { %v1486_v3 = vsub.f32 1.5, %v1485_v41 }
 0xf4c   : > { %1903 = vadd.xlane.f32.xlu0 %v1902_v45  ;;  %v1487_v47 = vmul.f32 %v3203_v59, %v1486_v3 }
 0xf4e   : > { %v1491_v18 = vsel %vm1490_vm7, %v3203_v59, %v1487_v47  ;;  %3155 = vrot.lane.b32.xlu1 %v3154_v6, %s4142_s3 }
 0xf4f   : > { %v1492_v1 = vmul.f32 %v1491_v18, %v3935_v35  ;;  %v2237_v35 = vld [vmem:[%s4140_s23 + $0x10] sm:$0xff] }
 0xf50   : > { %2257 = vmatpush.msra.mxu2 %v2237_v35 }
 0xf51   : > { %v1497_v30 = vmul.f32 %v3162_v15, %v1492_v1 }
 0xf52   : > { %2378 = vmatpush.msrb.mxu2 %v2365_v4 }
 0xf54   : > { %2379 = vmatpush.msrb.mxu2 %v2364_v5 }
 0xf56   : > { %2380 = vmatpush.msrb.mxu2 %v2363_v8 }
 0xf58   : > { %2381 = vmatpush.msrb.mxu2 %v2362_v38 }
 0xf60   : > { %3130 = vrot.lane.b32.xlu0 %v3129_v7, %s4142_s3 }
 0xfb7   : > { %v2211_v16 = vpop.xlane.xlu0 %2210 }
 0xfb8   : > { %3204 = vrcp.f32 %v2211_v16 }
 0xfbe   : > { %v3205_v52 = vpop.eup %3204 }
 0xfbf   : > { %v2213_v55 = vmul.f32 %v3205_v52, %v3201_v24  ;;  %v1904_v9 = vpop.xlane.xlu0 %1903  ;;  %v3144_v24 = vpack.i.bf16 %v2308_v0, %v2309_v50 }
 0xfc0   : > { %v1905_v11 = vmul.f32 %v1904_v9, %v3627_v54 }
 0xfc1   : > { %2965 = vmatmul.msk.f32.vlgmr.msra.gmra.mxu1 %vm1105_vm9, %v2213_v55  ;;  %3145 = vrot.lane.b32.xlu0 %v3144_v24, %s4142_s3 }
 0xfc2   : > { %v1906_v26 = vadd.f32 1e-06, %v1905_v11 }
 0xfc4   : > { %3206 = vrsqrt.f32 %v1906_v26  ;;  %vm1913_vm11 = vweird.f32 %v1906_v26 }
 0xfca   : > { %v3207_v12 = vpop.eup %3206 }
 0xfcb   : > { %v1908_v22 = vmul.f32 %v3207_v12, %v1906_v26  ;;  %vm1914_vm10 = vweird.f32 %v3207_v12 }
 0xfcc   : > { %vm1915_vm12 = vmor %vm1913_vm11, %vm1914_vm10 }
 0xfcd   : > { %v1909_v13 = vmul.f32 %v3207_v12, %v1908_v22 }
 0xfcf   : > { %v1910_v14 = vmul.f32 0.5, %v1909_v13 }
 0xfd1   : > { %v1911_v23 = vsub.f32 1.5, %v1910_v14 }
 0xfd2   : > { %v3131_v16 = vpop.permute.xlu0 %3130 }
 0xfd3   : > { %v1912_v49 = vmul.f32 %v3207_v12, %v1911_v23  ;;  %v3132_v59 = vunpack.i.l.bf16 %v3131_v16  ;;  %v3133_v60 = vunpack.i.h.bf16 %v3131_v16 }
 0xfd5   : > { %v1916_v20 = vsel %vm1915_vm12, %v3207_v12, %v1912_v49 }
 0xfd6   : > { %v1917_v40 = vmul.f32 %v1916_v20, %v1900_v31  ;;  %v2282_v31 = vpop.f32.mrf.mxu3 }
 0xfd8   : > { %v1918_v37 = vmul.f32 %v3162_v15, %v1917_v40 }
 0xfda   : > { %v1919_v42 = vsub.f32 %v1918_v37, %v1497_v30 }
 0xfdc   : > { %v2991_v61 = vceil.f32 %v1919_v42  ;;  %v2992_v62 = vfloor.f32 %v1919_v42  ;;  %vm2990_vm13 = vcmp.lt.s32.totalorder %v1919_v42, 0 }
 0xfde   : > { %v2993_v46 = vsel %vm2990_vm13, %v2991_v61, %v2992_v62 }
 0xfdf   : > { %v2994_v63 = vcvt.f32.s32 %v2993_v46 }
 0xfe1   : > { %v1921_v43 = vcvt.s32.f32 %v2994_v63 }
 0xfe3   : > { %v1922_v17 = vperm.slane %v1921_v43, 0 }
 0xfe5   : > { %v3970_v48 = vadd.f32 %v1922_v17, %v1918_v37 }
 0xfe7   : > { %2969 = vmatmul.msk.f32.vlgmr.msrb.gmra.mxu1 %vm973_vm2, %v3970_v48 }
0x1033   : > { %v3146_v7 = vpop.permute.xlu0 %3145 }
0x1034   : > { %v3147_v52 = vunpack.i.l.bf16 %v3146_v7  ;;  %v3148_v55 = vunpack.i.h.bf16 %v3146_v7  ;;  %v2726_v7 = vld [vmem:[%s4130_s6 + $0x18] sm:$0xff] }
0x103e   : > { %v2234_v25 = vpop.f32.mrf.mxu1 }
0x103f   : > { %2966 = vmatmul.msk.f32.vlgmr.msra.gmra.mxu2 %vm1078_vm8, %v2234_v25 }
0x1040   : > { %2512 = vmatpush.msra.mxu2 %v3132_v59 }
0x1042   : > { %2513 = vmatpush.msra.mxu2 %v3133_v60 }
0x1047   : > { %2970 = vmatmul.msk.f32.vlgmr.msrb.gmra.mxu2 %vm973_vm2, %v3970_v48 }
0x1064   : > { %v2359_v27 = vpop.f32.mrf.mxu1 }
0x1065   : > { %2971 = vmatpush.xpose.msk.msrb.mxu3 %vm1078_vm8, %v2359_v27 }
0x10c2   : > { %v2259_v33 = vpop.f32.mrf.mxu2 }
0x10c3   : > { %v2283_v39 = vadd.f32 %v2282_v31, %v2259_v33 }
0x10c5   : > { %v3992_v45 = vadd.f32 %v2283_v39, %v3580_v28  ;;  %v3141_v28 = vpop.permute.xlu1 %3140 }
0x10c6   : > { %v3142_v2 = vunpack.i.l.bf16 %v3141_v28  ;;  %v3143_v21 = vunpack.i.h.bf16 %v3141_v28 }
0x10c7   : > { %v2286_v56 = vmul.f32 %v3992_v45, %v3992_v45 }
0x10c8   : > { %2476 = vmatpush.msra.mxu1 %v3142_v2 }
0x10c9   : > { %v2287_v57 = vsel %vm973_vm2, %v2286_v56, 0.0 }
0x10ca   : > { %2288 = vadd.xlane.f32.xlu2 %v2287_v57  ;;  %v2383_v58 = vpop.f32.mrf.mxu2  ;;  %2477 = vmatpush.msra.mxu1 %v3143_v21  ;;  %v2690_v21 = vld [vmem:[%s4148_s2 + $0x18] sm:$0xff] }
0x10cb   : > { %2441 = vmatpush.msra.mxu0 %v2383_v58 }
0x10cc   : > { %2478 = vmatpush.msra.mxu1 %v3147_v52  ;;  %v2689_v52 = vld [vmem:[%s4148_s2 + $0x10] sm:$0xff] }
0x10cd   : > { %v3151_v23 = vpop.permute.xlu1 %3150 }
0x10ce   : > { %2479 = vmatpush.msra.mxu1 %v3148_v55  ;;  %v3153_v49 = vunpack.i.h.bf16 %v3151_v23  ;;  %v3152_v15 = vunpack.i.l.bf16 %v3151_v23  ;;  %v2725_v55 = vld [vmem:[%s4130_s6 + $0x10] sm:$0xff]  ;;  %v2755_v23 = vld [vmem:[%s3464_s17 + $0x38] sm:$0xff] }
0x10d0   : > { %2548 = vmatpush.msra.mxu3 %v3152_v15  ;;  %v2753_v15 = vld [vmem:[%s3464_s17 + $0x28] sm:$0xff] }
0x10d2   : > { %2549 = vmatpush.msra.mxu3 %v3153_v49  ;;  %v2754_v49 = vld [vmem:[%s3464_s17 + $0x30] sm:$0xff] }
0x10d5   : > { %v3156_v1 = vpop.permute.xlu1 %3155 }
0x10d6   : > { %v3158_v20 = vunpack.i.h.bf16 %v3156_v1  ;;  %v3157_v40 = vunpack.i.l.bf16 %v3156_v1  ;;  %v2752_v1 = vld [vmem:[%s3464_s17 + $0x20] sm:$0xff] }
0x10d8   : > { %2550 = vmatpush.msra.mxu3 %v3157_v40  ;;  %v2750_v40 = vld [vmem:[%s3464_s17 + $0x10] sm:$0xff] }
0x10da   : > { %2551 = vmatpush.msra.mxu3 %v3158_v20  ;;  %v2751_v20 = vld [vmem:[%s3464_s17 + $0x18] sm:$0xff] }
0x10e2   : > { %3135 = vrot.lane.b32.xlu2 %v3134_v53, %s4142_s3  ;;  %s4146_s3 = sld [smem:[#allocation17_spill]] }
0x10e8   : > { %v3163_v47 = vld [vmem:[%s4146_s3] ss:$0 sm:$0xff]  ;;  %s4147_s3 = sld [smem:[#allocation21_spill]] }
0x10ee   : > { %v2447_v4 = vld [vmem:[%s4147_s3 + $0x8] sm:$0xff]  ;;  %v2446_v38 = vld [vmem:[%s4147_s3] sm:$0xff]  ;;  %v2617_v24 = vld [vmem:[%s4147_s3 + $0x18] sm:$0xff] }
0x10ef   : > { %v2616_v56 = vld [vmem:[%s4147_s3 + $0x10] sm:$0xff]  ;;  %s4149_s3 = sld [smem:[#allocation22_spill]] }
0x113d   : > { %v2289_v9 = vpop.xlane.xlu2 %2288 }
0x113e   : > { %v2290_v11 = vmul.f32 %v2289_v9, %v3627_v54  ;;  %v2688_v9 = vld [vmem:[%s4148_s2 + $0x8] sm:$0xff] }
0x1140   : > { %v2291_v51 = vadd.f32 1e-06, %v2290_v11  ;;  %v2724_v11 = vld [vmem:[%s4130_s6 + $0x8] sm:$0xff] }
0x1142   : > { %3208 = vrsqrt.f32 %v2291_v51  ;;  %vm2298_vm15 = vweird.f32 %v2291_v51 }
0x1145   : > { %v3136_v32 = vpop.permute.xlu2 %3135 }
0x1146   : > { %v3138_v53 = vunpack.i.h.bf16 %v3136_v32  ;;  %v3137_v19 = vunpack.i.l.bf16 %v3136_v32 }
0x1148   : > { %v3209_v26 = vpop.eup %3208  ;;  %2514 = vmatpush.msra.mxu2 %v3137_v19 }
0x1149   : > { %v2293_v41 = vmul.f32 %v3209_v26, %v2291_v51  ;;  %vm2299_vm14 = vweird.f32 %v3209_v26  ;;  %v2723_v51 = vld [vmem:[%s4130_s6] sm:$0xff]  ;;  %s2814_s6 = scalar_lea.hbm %s3474_s4, %s2986_s5 }
0x114a   : > { %2515 = vmatpush.msra.mxu2 %v3138_v53  ;;  %vm2300_vm1 = vmor %vm2298_vm15, %vm2299_vm14  ;;  %s2818_s12 = sshll.u32 %s2814_s6, 4  ;;  %s2819_s12 = int_to_ptr.hbm [resolvable:$true] %s2818_s12 }
0x114b   : > { %v2294_v44 = vmul.f32 %v3209_v26, %v2293_v41  ;;  %2975 = vmatmul.msk.f32.vlgmr.msra.gmra.mxu2 %vm973_vm2, %v3970_v48  ;;  %s3238_s13 = sshra.s32 %s2819_s12, 4  ;;  %s3239_s13 = int_to_ptr.hbm [resolvable:$true] %s3238_s13 }
0x114c   : > { %2635 = vmatpush.msrb.mxu2 %v2617_v24  ;;  %s3240_s5 = scalar_lea.hbm %s3239_s13, 8  ;;  %p3245_p0 = scmp.lt.s32.totalorder %s3239_s13, %s3474_s4 }
0x114d   : > { %v2295_v3 = vmul.f32 0.5, %v2294_v44  ;;  %p3241_p11 = scmp.ne.s32.totalorder %s3239_s13, %s3240_s5  ;;  %p3246_p1 = scmp.lt.s32.totalorder %s3244_s14, %s3240_s5 }
0x114e   : > { %2636 = vmatpush.msrb.mxu2 %v2616_v56 }
0x114f   : > { %v2296_v12 = vsub.f32 1.5, %v2295_v3  ;;  %p3242_p12 = pnand %p3241_p11, %p3514_p5  ;;  %p3247_p2 = por %p3246_p1, %p3245_p0 }
0x1150   : > { %2767 = vmatpush.msra.mxu2 %v2755_v23 }
0x1151   : > { %v2297_v22 = vmul.f32 %v3209_v26, %v2296_v12  ;;  %p3243_p13 = pneg %p3242_p12 }
0x1152   : > { %2768 = vmatpush.msra.mxu2 %v2754_v49 }
0x1153   : > { %v2301_v13 = vsel %vm2300_vm1, %v3209_v26, %v2297_v22  ;;  %p3248_p3 = pnand %p3247_p2, %p3243_p13 }
0x1154   : > { %v2302_v14 = vmul.f32 %v2301_v13, %v3992_v45  ;;  %2769 = vmatpush.msra.mxu2 %v2753_v15 }
0x1156   : > { %v2307_v18 = vmul.f32 %v3163_v47, %v2302_v14  ;;  %v3164_v47 = vld [vmem:[%s4149_s3] ss:$0 sm:$0xff]  ;;  %2770 = vmatpush.msra.mxu2 %v2752_v1  ;;  %s893_s3 = sand.u32 1, %s3278_s10  }
0x1157   : > { %s2804_s0 = scalar_lea.sflag [#allocation3], %s893_s3 }
0x1158   : > { %2968 = vmatmul.msk.f32.vlgmr.msrb.gmra.mxu0 %vm973_vm2, %v2307_v18  ;;  %2974 = vmatmul.msk.f32.vlgmr.msra.gmra.mxu1 %vm973_vm2, %v2307_v18 }
0x1159   : > { %2771 = vmatpush.msra.mxu2 %v2751_v20 }
0x115b   : > { %2772 = vmatpush.msra.mxu2 %v2750_v40 }
0x11ce   : > { %v2517_v30 = vpop.f32.mrf.mxu2 }
0x11cf   : > { %2977 = vmatpush.xpose.msk.msrb.mxu0 %vm1078_vm8, %v2517_v30  ;;  %v2749_v30 = vld [vmem:[%s3464_s17 + $0x8] sm:$0xff] }
0x11d0   : > { %2773 = vmatpush.msra.mxu2 %v2749_v30 }
0x11d5   : > { %v2332_v37 = vpop.f32.mrf.mxu0  ;;  %v2481_v8 = vpop.f32.mrf.mxu1 }
0x11d6   : > { %2972 = vmatmul.msk.f32.vlgmr.msrb.gmra.mxu3 %vm1078_vm8, %v2332_v37  ;;  %v2748_v37 = vld [vmem:[%s3464_s17] sm:$0xff] }
0x11d7   : > { %2658 = vmatpush.msrb.mxu3 %v2447_v4  ;;  %2774 = vmatpush.msra.mxu2 %v2748_v37 }
0x11d9   : > { %2659 = vmatpush.msrb.mxu3 %v2446_v38 }
0x11de   : > { %2976 = vmatmul.msk.f32.vlgmr.msra.gmra.mxu3 %vm973_vm2, %v3970_v48 }
0x1259   : > { %v2409_v42 = vpop.f32.mrf.mxu3 }
0x125a   : > { %v2412_v61 = vsel %vm1105_vm9, %v2409_v42, -inf }
0x125b   : > { %2413 = vmax.xlane.f32.xlu0 %v2412_v61 }
0x1261   : > { %v2553_v62 = vpop.f32.mrf.mxu3 }
0x1262   : > { %2611 = vmatpush.msrb.mxu1 %v2553_v62 }
0x1264   : > { %2739 = vmatpush.msra.mxu1 %v2726_v7 }
0x1266   : > { %2740 = vmatpush.msra.mxu1 %v2725_v55 }
0x1268   : > { %2741 = vmatpush.msra.mxu1 %v2724_v11 }
0x126a   : > { %2742 = vmatpush.msra.mxu1 %v2723_v51 }
0x12ce   : > { %v2414_v46 = vpop.xlane.xlu0 %2413 }
0x12cf   : > { %v2415_v63 = vsub.f32 %v2409_v42, %v2414_v46 }
0x12d1   : > { %v2416_v43 = vmul.f32 1.442695, %v2415_v63 }
0x12d3   : > { %3210 = vpow2.f32 %v2416_v43 }
0x12d9   : > { %v3211_v17 = vpop.eup %3210 }
0x12da   : > { %v2418_v35 = vsel %vm1105_vm9, %v3211_v17, 0.0 }
0x12db   : > { %2419 = vadd.xlane.f32.xlu2 %v2418_v35 }
0x134e   : > { %v2420_v5 = vpop.xlane.xlu2 %2419 }
0x134f   : > { %3212 = vrcp.f32 %v2420_v5 }
0x1355   : > { %v3213_v48 = vpop.eup %3212 }
0x1356   : > { %v2422_v29 = vmul.f32 %v3213_v48, %v3211_v17 }
0x1358   : > { %2973 = vmatmul.msk.f32.vlgmr.msra.gmra.mxu0 %vm1105_vm9, %v2422_v29 }
0x1359   : > { %2706 = vmatpush.msra.mxu0 %v2690_v21 }
0x135b   : > { %2707 = vmatpush.msra.mxu0 %v2689_v52 }
0x135d   : > { %2708 = vmatpush.msra.mxu0 %v2688_v9 }
0x1360   : > { %2978 = vmatmul.msk.f32.vlgmr.msrb.gmra.mxu0 %vm1078_vm8, %v2481_v8 }
0x13d5   : > { %v2443_v6 = vpop.f32.mrf.mxu0 }
0x13d6   : > { %2981 = vmatmul.msk.f32.vlgmr.msrb.gmra.mxu3 %vm1078_vm8, %v2443_v6 }
0x13dd   : > { %v2579_v25 = vpop.f32.mrf.mxu0 }
0x13de   : > { %v2582_v27 = vsel %vm1105_vm9, %v2579_v25, -inf }
0x13df   : > { %2583 = vmax.xlane.f32.xlu1 %v2582_v27 }
0x1452   : > { %v2584_v34 = vpop.xlane.xlu1 %2583 }
0x1453   : > { %v2585_v36 = vsub.f32 %v2579_v25, %v2584_v34 }
0x1455   : > { %v2586_v50 = vmul.f32 1.442695, %v2585_v36 }
0x1457   : > { %3214 = vpow2.f32 %v2586_v50 }
0x1459   : > { %v2661_v58 = vpop.f32.mrf.mxu3 }
0x145d   : > { %v3215_v0 = vpop.eup %3214 }
0x145e   : > { %v2588_v10 = vsel %vm1105_vm9, %v3215_v0, 0.0 }
0x145f   : > { %2589 = vadd.xlane.f32.xlu0 %v2588_v10 }
0x14d2   : > { %v2590_v31 = vpop.xlane.xlu0 %2589 }
0x14d3   : > { %3216 = vrcp.f32 %v2590_v31 }
0x14d9   : > { %v3217_v33 = vpop.eup %3216 }
0x14da   : > { %v2592_v39 = vmul.f32 %v3217_v33, %v3215_v0 }
0x14dc   : > { %2979 = vmatmul.msk.f32.vlgmr.msrb.gmra.mxu1 %vm1105_vm9, %v2592_v39  ;;  %v3165_v39 = vld [vmem:[%s3469_s27] ss:$0 sm:$0xff] }
0x1559   : > { %v2613_v57 = vpop.f32.mrf.mxu1 }
0x155a   : > { %2980 = vmatmul.msk.f32.vlgmr.msrb.gmra.mxu2 %vm1078_vm8, %v2613_v57 }
0x15dd   : > { %v2638_v16 = vpop.f32.mrf.mxu2 }
0x15de   : > { %v2662_v59 = vadd.f32 %v2661_v58, %v2638_v16 }
0x15e0   : > { %v4026_v60 = vadd.f32 %v2662_v59, %v3992_v45  ;;  %v2687_v45 = vld [vmem:[%s4148_s2] sm:$0xff]  ;;  %s2911_s2 = sshll.u32 %s893_s3, 3 }
0x15e1   : > { %2709 = vmatpush.msra.mxu0 %v2687_v45  ;;  %s895_s8 = scalar_lea.vmem [#allocation2], %s2911_s2 }
0x15e2   : > { %v2665_v28 = vmul.f32 %v4026_v60, %v4026_v60  ;;  %s2816_s9 = sshll.u32 %s895_s8, 4  ;;  %s2817_s9 = int_to_ptr.vmem [resolvable:$true] %s2816_s9 }
0x15e4   : > { %v2666_v2 = vsel %vm973_vm2, %v2665_v28, 0.0 }
0x15e5   : > { %2667 = vadd.xlane.f32.xlu2 %v2666_v2 }
0x1658   : > { %v2668_v32 = vpop.xlane.xlu2 %2667 }
0x1659   : > { %v2669_v53 = vmul.f32 %v2668_v32, %v3627_v54 }
0x165b   : > { %v2670_v19 = vadd.f32 1e-06, %v2669_v53 }
0x165d   : > { %3218 = vrsqrt.f32 %v2670_v19  ;;  %vm2677_vm9 = vweird.f32 %v2670_v19 }
0x1663   : > { %v3219_v26 = vpop.eup %3218 }
0x1664   : > { %v2672_v41 = vmul.f32 %v3219_v26, %v2670_v19  ;;  %vm2678_vm8 = vweird.f32 %v3219_v26 }
0x1665   : > { %vm2679_vm3 = vmor %vm2677_vm9, %vm2678_vm8 }
0x1666   : > { %v2673_v44 = vmul.f32 %v3219_v26, %v2672_v41 }
0x1668   : > { %v2674_v3 = vmul.f32 0.5, %v2673_v44 }
0x166a   : > { %v2675_v12 = vsub.f32 1.5, %v2674_v3 }
0x166c   : > { %v2676_v22 = vmul.f32 %v3219_v26, %v2675_v12 }
0x166e   : > { %v2680_v13 = vsel %vm2679_vm3, %v3219_v26, %v2676_v22 }
0x166f   : > { %v2681_v14 = vmul.f32 %v2680_v13, %v4026_v60 }
0x1671   : > { %v2686_v18 = vmul.f32 %v3164_v47, %v2681_v14 }
0x1673   : > { %2982 = vmatmul.msk.f32.vlgmr.msra.gmra.mxu0 %vm973_vm2, %v2686_v18  ;;  %2983 = vmatmul.msk.f32.vlgmr.msra.gmra.mxu1 %vm973_vm2, %v2686_v18 }
0x16f0   : > { %v2711_v42 = vpop.f32.mrf.mxu0  ;;  %v2744_v48 = vpop.f32.mrf.mxu1 }
0x16f1   : > { %v2714_v61 = vmul.f32 %v2711_v42, %v2711_v42 }
0x16f3   : > { %v2715_v62 = vmul.f32 %v2714_v61, %v2711_v42 }
0x16f5   : > { %v2716_v46 = vmul.f32 0.044715, %v2715_v62 }
0x16f7   : > { %v2717_v63 = vadd.f32 %v2716_v46, %v2711_v42 }
0x16f9   : > { %v2718_v43 = vmul.f32 0.7978846, %v2717_v63 }
0x16fb   : > { %3220 = vtanh.f32 %v2718_v43 }
0x1701   : > { %v3221_v17 = vpop.eup %3220 }
0x1702   : > { %v2720_v35 = vadd.f32 1.0, %v3221_v17 }
0x1704   : > { %v2721_v4 = vmul.f32 0.5, %v2720_v35 }
0x1706   : > { %v2722_v5 = vmul.f32 %v2721_v4, %v2711_v42 }
0x1708   : > { %v2747_v29 = vmul.f32 %v2744_v48, %v2722_v5 }
0x170a   : > { %2984 = vmatmul.msk.f32.vlgmr.msra.gmra.mxu2 %vm919_vm0, %v2747_v29 }
0x178d   : > { %v2776_v8 = vpop.f32.mrf.mxu2 }
0x178e   : > { %v2779_v38 = vadd.f32 %v2776_v8, %v4026_v60 }
0x1790   : > { %v2780_v6 = vmul.f32 %v2779_v38, %v2779_v38 }
0x1792   : > { %v2781_v25 = vsel %vm973_vm2, %v2780_v6, 0.0 }
0x1793   : > { %2782 = vadd.xlane.f32.xlu0 %v2781_v25 }
0x1806   : > { %v2783_v27 = vpop.xlane.xlu0 %2782 }
0x1807   : > { %v2784_v34 = vmul.f32 %v2783_v27, %v3627_v54 }
0x1809   : > { %v2785_v36 = vadd.f32 1e-06, %v2784_v34 }
0x180b   : > { %3222 = vrsqrt.f32 %v2785_v36  ;;  %vm2792_vm4 = vweird.f32 %v2785_v36 }
0x1811   : > { %v3223_v50 = vpop.eup %3222 }
0x1812   : > { %v2787_v0 = vmul.f32 %v3223_v50, %v2785_v36  ;;  %vm2793_vm0 = vweird.f32 %v3223_v50 }
0x1813   : > { %vm2794_vm5 = vmor %vm2792_vm4, %vm2793_vm0 }
0x1814   : > { %v2788_v10 = vmul.f32 %v3223_v50, %v2787_v0 }
0x1816   : > { %v2789_v24 = vmul.f32 0.5, %v2788_v10 }
0x1818   : > { %v2790_v31 = vsub.f32 1.5, %v2789_v24 }
0x181a   : > { %v2791_v33 = vmul.f32 %v3223_v50, %v2790_v31 }
0x181c   : > { %v2795_v56 = vsel %vm2794_vm5, %v3223_v50, %v2791_v33 }
0x181d   : > { %v2796_v54 = vmul.f32 %v2795_v56, %v2779_v38 }
0x181f   : > { %v2801_v57 = vmul.f32 %v3165_v39, %v2796_v54 }
0x1821   : > { %2802 = vst.msk [vmem:[%s895_s8] sm:$0xff] %vm973_vm2, %v2801_v57 }
0x1822   : > { %3251 = shalt.err (!%p3248_p3)
}
0x1823   : > { %2995 = dma.vmem_to_hbm [thread:$0]  (%p3514_p5), %s2817_s9, 128, %s2819_s12, %s2804_s0  }
0x1824 PF: > { %p3001_p4 = scmp.ge.s32.totalorder %s3286_s15, 2  ;;  %s2830_s8 = sand.u32 1, %s3274_s7  }
0x1825   : > { %s2831_s6 = scalar_lea.sflag [#allocation3], %s2830_s8 }
0x1826   : > { %p2998_p7 = pnand %p3001_p4, %p3518_p6 }
0x1828   : > { %p2999_p8 = pneg %p2998_p7 }
0x182a   : > { %3269 = dma.done.wait (%p2999_p8), %s2831_s6, 128  }
0x182b   : > { %3271 = vsyncadd (%p2999_p8), %s2831_s6, 4294967168  ;;  %p69_p9 = scmp.ge.s32.totalorder %s3501_s18, 4   ;;  %s4150_s7 = smov %s3278_s10 }
0x182c   : > { %s4151_s10 = smov %s3282_s11  ;;  %s4152_s11 = smov %s3512_s26 }
0x182d   : > { %s4153_s15 = smov %s3501_s18  ;;  %71 = sbr.rel (!%p69_p9) target bundleno = 56 (0x38), region = 202 }
0x1832   :  { %2837 = vsyncpa [#allocation3], 1 }
0x1833   :  { %2839 = vsyncpa [#allocation3 + $0x1], 1 }

</bundles_post_ra>
